<compile_context>
chip_gen: v6e
topology: v6e:2x2x1
jax: 0.10.0
libtpu: 0.0.40
codegen_flags: <defaults>
</compile_context>

<pallas_src>
import numpy as np
import jax
import jax.numpy as jnp
from jax.experimental import pallas as pl
from jax.experimental.pallas import tpu as pltpu

N_QUBITS = 2
PARAM_COUNT = 12
N_LAYERS = 3
LANE = 128
MAX_BLOCK_ROWS = 256  # 256*128 = 32768 samples/step; ~2 MiB live f32 -> safe on v7x VMEM

# basis-state index s = 2*q1 + q0 (Qiskit little-endian); pairs are (bit_q=0, bit_q=1)
_PAIRS = {0: ((0, 1), (2, 3)),   # qubit 0
          1: ((0, 2), (1, 3))}   # qubit 1


def _ry(q, c, s, a_re, a_im):
    """Apply RY with c=cos(theta/2), s=sin(theta/2) on qubit q (real 2x2 rotation)."""
    a_re = list(a_re)
    a_im = list(a_im)
    for (i, j) in _PAIRS[q]:
        ri, rj = a_re[i], a_re[j]
        ii, ij = a_im[i], a_im[j]
        a_re[i] = c * ri - s * rj
        a_im[i] = c * ii - s * ij
        a_re[j] = s * ri + c * rj
        a_im[j] = s * ii + c * ij
    return a_re, a_im


def _rz(q, c, s, a_re, a_im):
    """Apply RZ = diag(e^{-i theta/2}, e^{+i theta/2}) on qubit q; c=cos(theta/2), s=sin(theta/2)."""
    a_re = list(a_re)
    a_im = list(a_im)
    for (i, j) in _PAIRS[q]:
        ri, ii = a_re[i], a_im[i]
        rj, ij = a_re[j], a_im[j]
        a_re[i] = ri * c + ii * s      # * e^{-i theta/2}
        a_im[i] = ii * c - ri * s
        a_re[j] = rj * c - ij * s      # * e^{+i theta/2}
        a_im[j] = ij * c + rj * s
    return a_re, a_im


def _cx(a_re, a_im):
    """CX(control=0, target=1): swap amplitudes of |01> (s=1) and |11> (s=3)."""
    a_re = list(a_re)
    a_im = list(a_im)
    a_re[1], a_re[3] = a_re[3], a_re[1]
    a_im[1], a_im[3] = a_im[3], a_im[1]
    return a_re, a_im


def vqa_kernel(cw_ref, sw_ref, x_ref, out_ref):
    # cw_ref / sw_ref: SMEM f32[12] = cos(w/2), sin(w/2)   (scalar prefetch)
    # x_ref:   VMEM (2, rows, 128) f32 -- batch along lanes (and sublanes)
    # out_ref: VMEM (2, rows, 128) f32 -- row 0 = <ZI>, row 1 = <IZ>
    x0 = x_ref[0]            # (rows, 128)
    x1 = x_ref[1]            # (rows, 128)

    one = jnp.ones_like(x0)
    zero = jnp.zeros_like(x0)
    # statevector |q1 q0>, starts in |00>
    a_re = [one, zero, zero, zero]
    a_im = [zero, zero, zero, zero]

    def half_angle_series(xq):
        # cos/sin of (layer+1)*xq/2 for layer = 0,1,2 using angle recurrences:
        # only 2 EUP transcendentals per qubit; the rest is VPU mul/add.
        c1 = jnp.cos(0.5 * xq)
        s1 = jnp.sin(0.5 * xq)
        c2 = c1 * c1 - s1 * s1
        s2 = 2.0 * s1 * c1
        c3 = c2 * c1 - s2 * s1
        s3 = s2 * c1 + c2 * s1
        return [(c1, s1), (c2, s2), (c3, s3)]

    cs_q0 = half_angle_series(x0)
    cs_q1 = half_angle_series(x1)

    idx = 0
    for layer in range(N_LAYERS):
        # data re-uploading RY gates (batch-dependent angles)
        c, s = cs_q0[layer]
        a_re, a_im = _ry(0, c, s, a_re, a_im)
        c, s = cs_q1[layer]
        a_re, a_im = _ry(1, c, s, a_re, a_im)
        a_re, a_im = _cx(a_re, a_im)
        # trainable RY/RZ gates: batch-shared scalar cos/sin from SMEM
        for q in range(N_QUBITS):
            a_re, a_im = _ry(q, cw_ref[idx], sw_ref[idx], a_re, a_im)
            idx += 1
            a_re, a_im = _rz(q, cw_ref[idx], sw_ref[idx], a_re, a_im)
            idx += 1
        a_re, a_im = _cx(a_re, a_im)

    # probabilities per basis state
    p = [a_re[s_] * a_re[s_] + a_im[s_] * a_im[s_] for s_ in range(4)]
    # SparsePauliOp('ZI') -> Z on qubit 1 ; SparsePauliOp('IZ') -> Z on qubit 0
    out_ref[0, :, :] = (p[0] + p[1] - p[2] - p[3]).astype(out_ref.dtype)
    out_ref[1, :, :] = (p[0] - p[1] + p[2] - p[3]).astype(out_ref.dtype)


def vqa_layer(x, weights):
    """x: (B, 2) f32, weights: (12,) f32 -> (B, 2) f32 of [<ZI>, <IZ>] per sample."""
    B = x.shape[0]
    x = x.astype(jnp.float32)
    w = weights.reshape(PARAM_COUNT).astype(jnp.float32)

    # hoist the 24 batch-shared transcendentals out of the kernel
    cw = jnp.cos(0.5 * w)
    sw = jnp.sin(0.5 * w)

    # batch -> (rows, 128) lane-dense layout
    rows = max(1, -(-B // LANE))                     # cdiv(B, 128)
    if rows <= MAX_BLOCK_ROWS:
        block_rows = rows
        rows_pad = rows
    else:
        block_rows = MAX_BLOCK_ROWS
        rows_pad = -(-rows // block_rows) * block_rows
    b_pad = rows_pad * LANE

    x_t = jnp.transpose(x)                           # (2, B)
    x_t = jnp.pad(x_t, ((0, 0), (0, b_pad - B)))     # zero-pad dead lanes
    x_t = x_t.reshape(2, rows_pad, LANE)

    out = pl.pallas_call(
        vqa_kernel,
        out_shape=jax.ShapeDtypeStruct((2, rows_pad, LANE), jnp.float32),
        grid_spec=pltpu.PrefetchScalarGridSpec(
            num_scalar_prefetch=2,                   # cw, sw -> SMEM
            grid=(rows_pad // block_rows,),
            in_specs=[
                pl.BlockSpec((2, block_rows, LANE), lambda i, cw, sw: (0, i, 0)),
            ],
            out_specs=pl.BlockSpec((2, block_rows, LANE), lambda i, cw, sw: (0, i, 0)),
        ),
        compiler_params=pltpu.CompilerParams(
            dimension_semantics=("parallel",),       # shard batch grid over v7x's 2 TCs
        ),
    )(cw, sw, x_t)

    out = out.reshape(2, b_pad)[:, :B]               # drop pad lanes
    return jnp.transpose(out)                        # (B, 2): col0 = <ZI>, col1 = <IZ>


def _reference(x, w):
    """Pure-numpy statevector reference (mirrors create_vqa_circuit + ZI/IZ expvals)."""
    x = np.asarray(x, np.float64)
    w = np.asarray(w, np.float64)
    B = x.shape[0]
    out = np.zeros((B, 2), np.float32)
    pairs = {0: ((0, 1), (2, 3)), 1: ((0, 2), (1, 3))}
    for b in range(B):
        st = np.zeros(4, np.complex128)
        st[0] = 1.0

        def ry(theta, q, st):
            c, s = np.cos(theta / 2), np.sin(theta / 2)
            st = st.copy()
            for i, j in pairs[q]:
                ai, aj = st[i], st[j]
                st[i] = c * ai - s * aj
                st[j] = s * ai + c * aj
            return st

        def rz(theta, q, st):
            st = st.copy()
            for i, j in pairs[q]:
                st[i] *= np.exp(-1j * theta / 2)
                st[j] *= np.exp(1j * theta / 2)
            return st

        def cx(st):
            st = st.copy()
            st[1], st[3] = st[3], st[1]
            return st

        idx = 0
        for layer in range(N_LAYERS):
            st = ry(x[b, 0] * (layer + 1), 0, st)
            st = ry(x[b, 1] * (layer + 1), 1, st)
            st = cx(st)
            for q in range(N_QUBITS):
                st = ry(w[idx], q, st); idx += 1
                st = rz(w[idx], q, st); idx += 1
            st = cx(st)
        p = np.abs(st) ** 2
        out[b, 0] = p[0] + p[1] - p[2] - p[3]
        out[b, 1] = p[0] - p[1] + p[2] - p[3]
    return out


if __name__ == "__main__":
    key = jax.random.PRNGKey(0)
    kx, kw = jax.random.split(key)
    B = 8
    x = jax.random.normal(kx, (B, 2), dtype=jnp.float32)                 # one 2-d input per sample
    weights = jax.random.normal(kw, (PARAM_COUNT,), dtype=jnp.float32)   # nn.Parameter(randn(12))

    out = jax.block_until_ready(vqa_layer(x, weights))

    ref = _reference(np.asarray(x), np.asarray(weights))
    np.testing.assert_allclose(np.asarray(out), ref, rtol=1e-5, atol=1e-5)
    print("KERNEL_OK")
</pallas_src>

<mosaic_0001>
module attributes {stable_mosaic.version = 11 : i64} {
  func.func @vqa_kernel(%arg0: i32, %arg1: memref<12xf32, #tpu.memory_space<smem>>, %arg2: memref<12xf32, #tpu.memory_space<smem>>, %arg3: memref<2x1x128xf32, #tpu.memory_space<vmem>>, %arg4: memref<2x1x128xf32, #tpu.memory_space<vmem>>) attributes {dimension_semantics = [#tpu.dimension_semantics<parallel>], iteration_bounds = array<i64: 1>, scalar_prefetch = 2 : i64, scratch_operands = 0 : i64, tpu.core_type = #tpu.core_type<tc>, window_params = [{transform_indices = @transform_0, window_bounds = array<i64: 2, 1, 128>}, {transform_indices = @transform_1, window_bounds = array<i64: 2, 1, 128>}]} {
    %c0 = arith.constant 0 : index
    %c0_0 = arith.constant 0 : index
    %c0_1 = arith.constant 0 : index
    %0 = vector.load %arg3[%c0, %c0_0, %c0_1] : memref<2x1x128xf32, #tpu.memory_space<vmem>>, vector<1x1x128xf32>
    %1 = vector.shape_cast %0 : vector<1x1x128xf32> to vector<1x128xf32>
    %c1 = arith.constant 1 : index
    %c0_2 = arith.constant 0 : index
    %c0_3 = arith.constant 0 : index
    %2 = vector.load %arg3[%c1, %c0_2, %c0_3] : memref<2x1x128xf32, #tpu.memory_space<vmem>>, vector<1x1x128xf32>
    %3 = vector.shape_cast %2 : vector<1x1x128xf32> to vector<1x128xf32>
    %cst = arith.constant 1.000000e+00 : f32
    %4 = vector.broadcast %cst : f32 to vector<1x128xf32>
    %cst_4 = arith.constant 0.000000e+00 : f32
    %5 = vector.broadcast %cst_4 : f32 to vector<1x128xf32>
    %cst_5 = arith.constant 5.000000e-01 : f32
    %6 = vector.broadcast %cst_5 : f32 to vector<1x128xf32>
    %7 = arith.mulf %6, %1 : vector<1x128xf32>
    %8 = math.cos %7 : vector<1x128xf32>
    %cst_6 = arith.constant 5.000000e-01 : f32
    %9 = vector.broadcast %cst_6 : f32 to vector<1x128xf32>
    %10 = arith.mulf %9, %1 : vector<1x128xf32>
    %11 = math.sin %10 : vector<1x128xf32>
    %12 = arith.mulf %8, %8 : vector<1x128xf32>
    %13 = arith.mulf %11, %11 : vector<1x128xf32>
    %14 = arith.subf %12, %13 : vector<1x128xf32>
    %cst_7 = arith.constant 2.000000e+00 : f32
    %15 = vector.broadcast %cst_7 : f32 to vector<1x128xf32>
    %16 = arith.mulf %15, %11 : vector<1x128xf32>
    %17 = arith.mulf %16, %8 : vector<1x128xf32>
    %18 = arith.mulf %14, %8 : vector<1x128xf32>
    %19 = arith.mulf %17, %11 : vector<1x128xf32>
    %20 = arith.subf %18, %19 : vector<1x128xf32>
    %21 = arith.mulf %17, %8 : vector<1x128xf32>
    %22 = arith.mulf %14, %11 : vector<1x128xf32>
    %23 = arith.addf %21, %22 : vector<1x128xf32>
    %cst_8 = arith.constant 5.000000e-01 : f32
    %24 = vector.broadcast %cst_8 : f32 to vector<1x128xf32>
    %25 = arith.mulf %24, %3 : vector<1x128xf32>
    %26 = math.cos %25 : vector<1x128xf32>
    %cst_9 = arith.constant 5.000000e-01 : f32
    %27 = vector.broadcast %cst_9 : f32 to vector<1x128xf32>
    %28 = arith.mulf %27, %3 : vector<1x128xf32>
    %29 = math.sin %28 : vector<1x128xf32>
    %30 = arith.mulf %26, %26 : vector<1x128xf32>
    %31 = arith.mulf %29, %29 : vector<1x128xf32>
    %32 = arith.subf %30, %31 : vector<1x128xf32>
    %cst_10 = arith.constant 2.000000e+00 : f32
    %33 = vector.broadcast %cst_10 : f32 to vector<1x128xf32>
    %34 = arith.mulf %33, %29 : vector<1x128xf32>
    %35 = arith.mulf %34, %26 : vector<1x128xf32>
    %36 = arith.mulf %32, %26 : vector<1x128xf32>
    %37 = arith.mulf %35, %29 : vector<1x128xf32>
    %38 = arith.subf %36, %37 : vector<1x128xf32>
    %39 = arith.mulf %35, %26 : vector<1x128xf32>
    %40 = arith.mulf %32, %29 : vector<1x128xf32>
    %41 = arith.addf %39, %40 : vector<1x128xf32>
    %42 = arith.mulf %8, %4 : vector<1x128xf32>
    %43 = arith.mulf %11, %5 : vector<1x128xf32>
    %44 = arith.subf %42, %43 : vector<1x128xf32>
    %45 = arith.mulf %8, %5 : vector<1x128xf32>
    %46 = arith.mulf %11, %5 : vector<1x128xf32>
    %47 = arith.subf %45, %46 : vector<1x128xf32>
    %48 = arith.mulf %11, %4 : vector<1x128xf32>
    %49 = arith.mulf %8, %5 : vector<1x128xf32>
    %50 = arith.addf %48, %49 : vector<1x128xf32>
    %51 = arith.mulf %11, %5 : vector<1x128xf32>
    %52 = arith.mulf %8, %5 : vector<1x128xf32>
    %53 = arith.addf %51, %52 : vector<1x128xf32>
    %54 = arith.mulf %8, %5 : vector<1x128xf32>
    %55 = arith.mulf %11, %5 : vector<1x128xf32>
    %56 = arith.subf %54, %55 : vector<1x128xf32>
    %57 = arith.mulf %8, %5 : vector<1x128xf32>
    %58 = arith.mulf %11, %5 : vector<1x128xf32>
    %59 = arith.subf %57, %58 : vector<1x128xf32>
    %60 = arith.mulf %11, %5 : vector<1x128xf32>
    %61 = arith.mulf %8, %5 : vector<1x128xf32>
    %62 = arith.addf %60, %61 : vector<1x128xf32>
    %63 = arith.mulf %11, %5 : vector<1x128xf32>
    %64 = arith.mulf %8, %5 : vector<1x128xf32>
    %65 = arith.addf %63, %64 : vector<1x128xf32>
    %66 = arith.mulf %26, %44 : vector<1x128xf32>
    %67 = arith.mulf %29, %56 : vector<1x128xf32>
    %68 = arith.subf %66, %67 : vector<1x128xf32>
    %69 = arith.mulf %26, %47 : vector<1x128xf32>
    %70 = arith.mulf %29, %59 : vector<1x128xf32>
    %71 = arith.subf %69, %70 : vector<1x128xf32>
    %72 = arith.mulf %29, %44 : vector<1x128xf32>
    %73 = arith.mulf %26, %56 : vector<1x128xf32>
    %74 = arith.addf %72, %73 : vector<1x128xf32>
    %75 = arith.mulf %29, %47 : vector<1x128xf32>
    %76 = arith.mulf %26, %59 : vector<1x128xf32>
    %77 = arith.addf %75, %76 : vector<1x128xf32>
    %78 = arith.mulf %26, %50 : vector<1x128xf32>
    %79 = arith.mulf %29, %62 : vector<1x128xf32>
    %80 = arith.subf %78, %79 : vector<1x128xf32>
    %81 = arith.mulf %26, %53 : vector<1x128xf32>
    %82 = arith.mulf %29, %65 : vector<1x128xf32>
    %83 = arith.subf %81, %82 : vector<1x128xf32>
    %84 = arith.mulf %29, %50 : vector<1x128xf32>
    %85 = arith.mulf %26, %62 : vector<1x128xf32>
    %86 = arith.addf %84, %85 : vector<1x128xf32>
    %87 = arith.mulf %29, %53 : vector<1x128xf32>
    %88 = arith.mulf %26, %65 : vector<1x128xf32>
    %89 = arith.addf %87, %88 : vector<1x128xf32>
    %c0_11 = arith.constant 0 : index
    %90 = memref.load %arg1[%c0_11] : memref<12xf32, #tpu.memory_space<smem>>
    %c0_12 = arith.constant 0 : index
    %91 = memref.load %arg2[%c0_12] : memref<12xf32, #tpu.memory_space<smem>>
    %92 = vector.broadcast %90 : f32 to vector<1x128xf32>
    %93 = arith.mulf %92, %68 : vector<1x128xf32>
    %94 = vector.broadcast %91 : f32 to vector<1x128xf32>
    %95 = arith.mulf %94, %86 : vector<1x128xf32>
    %96 = arith.subf %93, %95 : vector<1x128xf32>
    %97 = vector.broadcast %90 : f32 to vector<1x128xf32>
    %98 = arith.mulf %97, %71 : vector<1x128xf32>
    %99 = vector.broadcast %91 : f32 to vector<1x128xf32>
    %100 = arith.mulf %99, %89 : vector<1x128xf32>
    %101 = arith.subf %98, %100 : vector<1x128xf32>
    %102 = vector.broadcast %91 : f32 to vector<1x128xf32>
    %103 = arith.mulf %102, %68 : vector<1x128xf32>
    %104 = vector.broadcast %90 : f32 to vector<1x128xf32>
    %105 = arith.mulf %104, %86 : vector<1x128xf32>
    %106 = arith.addf %103, %105 : vector<1x128xf32>
    %107 = vector.broadcast %91 : f32 to vector<1x128xf32>
    %108 = arith.mulf %107, %71 : vector<1x128xf32>
    %109 = vector.broadcast %90 : f32 to vector<1x128xf32>
    %110 = arith.mulf %109, %89 : vector<1x128xf32>
    %111 = arith.addf %108, %110 : vector<1x128xf32>
    %112 = vector.broadcast %90 : f32 to vector<1x128xf32>
    %113 = arith.mulf %112, %74 : vector<1x128xf32>
    %114 = vector.broadcast %91 : f32 to vector<1x128xf32>
    %115 = arith.mulf %114, %80 : vector<1x128xf32>
    %116 = arith.subf %113, %115 : vector<1x128xf32>
    %117 = vector.broadcast %90 : f32 to vector<1x128xf32>
    %118 = arith.mulf %117, %77 : vector<1x128xf32>
    %119 = vector.broadcast %91 : f32 to vector<1x128xf32>
    %120 = arith.mulf %119, %83 : vector<1x128xf32>
    %121 = arith.subf %118, %120 : vector<1x128xf32>
    %122 = vector.broadcast %91 : f32 to vector<1x128xf32>
    %123 = arith.mulf %122, %74 : vector<1x128xf32>
    %124 = vector.broadcast %90 : f32 to vector<1x128xf32>
    %125 = arith.mulf %124, %80 : vector<1x128xf32>
    %126 = arith.addf %123, %125 : vector<1x128xf32>
    %127 = vector.broadcast %91 : f32 to vector<1x128xf32>
    %128 = arith.mulf %127, %77 : vector<1x128xf32>
    %129 = vector.broadcast %90 : f32 to vector<1x128xf32>
    %130 = arith.mulf %129, %83 : vector<1x128xf32>
    %131 = arith.addf %128, %130 : vector<1x128xf32>
    %c1_13 = arith.constant 1 : index
    %132 = memref.load %arg1[%c1_13] : memref<12xf32, #tpu.memory_space<smem>>
    %c1_14 = arith.constant 1 : index
    %133 = memref.load %arg2[%c1_14] : memref<12xf32, #tpu.memory_space<smem>>
    %134 = vector.broadcast %132 : f32 to vector<1x128xf32>
    %135 = arith.mulf %96, %134 : vector<1x128xf32>
    %136 = vector.broadcast %133 : f32 to vector<1x128xf32>
    %137 = arith.mulf %101, %136 : vector<1x128xf32>
    %138 = arith.addf %135, %137 : vector<1x128xf32>
    %139 = vector.broadcast %132 : f32 to vector<1x128xf32>
    %140 = arith.mulf %101, %139 : vector<1x128xf32>
    %141 = vector.broadcast %133 : f32 to vector<1x128xf32>
    %142 = arith.mulf %96, %141 : vector<1x128xf32>
    %143 = arith.subf %140, %142 : vector<1x128xf32>
    %144 = vector.broadcast %132 : f32 to vector<1x128xf32>
    %145 = arith.mulf %106, %144 : vector<1x128xf32>
    %146 = vector.broadcast %133 : f32 to vector<1x128xf32>
    %147 = arith.mulf %111, %146 : vector<1x128xf32>
    %148 = arith.subf %145, %147 : vector<1x128xf32>
    %149 = vector.broadcast %132 : f32 to vector<1x128xf32>
    %150 = arith.mulf %111, %149 : vector<1x128xf32>
    %151 = vector.broadcast %133 : f32 to vector<1x128xf32>
    %152 = arith.mulf %106, %151 : vector<1x128xf32>
    %153 = arith.addf %150, %152 : vector<1x128xf32>
    %154 = vector.broadcast %132 : f32 to vector<1x128xf32>
    %155 = arith.mulf %116, %154 : vector<1x128xf32>
    %156 = vector.broadcast %133 : f32 to vector<1x128xf32>
    %157 = arith.mulf %121, %156 : vector<1x128xf32>
    %158 = arith.addf %155, %157 : vector<1x128xf32>
    %159 = vector.broadcast %132 : f32 to vector<1x128xf32>
    %160 = arith.mulf %121, %159 : vector<1x128xf32>
    %161 = vector.broadcast %133 : f32 to vector<1x128xf32>
    %162 = arith.mulf %116, %161 : vector<1x128xf32>
    %163 = arith.subf %160, %162 : vector<1x128xf32>
    %164 = vector.broadcast %132 : f32 to vector<1x128xf32>
    %165 = arith.mulf %126, %164 : vector<1x128xf32>
    %166 = vector.broadcast %133 : f32 to vector<1x128xf32>
    %167 = arith.mulf %131, %166 : vector<1x128xf32>
    %168 = arith.subf %165, %167 : vector<1x128xf32>
    %169 = vector.broadcast %132 : f32 to vector<1x128xf32>
    %170 = arith.mulf %131, %169 : vector<1x128xf32>
    %171 = vector.broadcast %133 : f32 to vector<1x128xf32>
    %172 = arith.mulf %126, %171 : vector<1x128xf32>
    %173 = arith.addf %170, %172 : vector<1x128xf32>
    %c2 = arith.constant 2 : index
    %174 = memref.load %arg1[%c2] : memref<12xf32, #tpu.memory_space<smem>>
    %c2_15 = arith.constant 2 : index
    %175 = memref.load %arg2[%c2_15] : memref<12xf32, #tpu.memory_space<smem>>
    %176 = vector.broadcast %174 : f32 to vector<1x128xf32>
    %177 = arith.mulf %176, %138 : vector<1x128xf32>
    %178 = vector.broadcast %175 : f32 to vector<1x128xf32>
    %179 = arith.mulf %178, %158 : vector<1x128xf32>
    %180 = arith.subf %177, %179 : vector<1x128xf32>
    %181 = vector.broadcast %174 : f32 to vector<1x128xf32>
    %182 = arith.mulf %181, %143 : vector<1x128xf32>
    %183 = vector.broadcast %175 : f32 to vector<1x128xf32>
    %184 = arith.mulf %183, %163 : vector<1x128xf32>
    %185 = arith.subf %182, %184 : vector<1x128xf32>
    %186 = vector.broadcast %175 : f32 to vector<1x128xf32>
    %187 = arith.mulf %186, %138 : vector<1x128xf32>
    %188 = vector.broadcast %174 : f32 to vector<1x128xf32>
    %189 = arith.mulf %188, %158 : vector<1x128xf32>
    %190 = arith.addf %187, %189 : vector<1x128xf32>
    %191 = vector.broadcast %175 : f32 to vector<1x128xf32>
    %192 = arith.mulf %191, %143 : vector<1x128xf32>
    %193 = vector.broadcast %174 : f32 to vector<1x128xf32>
    %194 = arith.mulf %193, %163 : vector<1x128xf32>
    %195 = arith.addf %192, %194 : vector<1x128xf32>
    %196 = vector.broadcast %174 : f32 to vector<1x128xf32>
    %197 = arith.mulf %196, %148 : vector<1x128xf32>
    %198 = vector.broadcast %175 : f32 to vector<1x128xf32>
    %199 = arith.mulf %198, %168 : vector<1x128xf32>
    %200 = arith.subf %197, %199 : vector<1x128xf32>
    %201 = vector.broadcast %174 : f32 to vector<1x128xf32>
    %202 = arith.mulf %201, %153 : vector<1x128xf32>
    %203 = vector.broadcast %175 : f32 to vector<1x128xf32>
    %204 = arith.mulf %203, %173 : vector<1x128xf32>
    %205 = arith.subf %202, %204 : vector<1x128xf32>
    %206 = vector.broadcast %175 : f32 to vector<1x128xf32>
    %207 = arith.mulf %206, %148 : vector<1x128xf32>
    %208 = vector.broadcast %174 : f32 to vector<1x128xf32>
    %209 = arith.mulf %208, %168 : vector<1x128xf32>
    %210 = arith.addf %207, %209 : vector<1x128xf32>
    %211 = vector.broadcast %175 : f32 to vector<1x128xf32>
    %212 = arith.mulf %211, %153 : vector<1x128xf32>
    %213 = vector.broadcast %174 : f32 to vector<1x128xf32>
    %214 = arith.mulf %213, %173 : vector<1x128xf32>
    %215 = arith.addf %212, %214 : vector<1x128xf32>
    %c3 = arith.constant 3 : index
    %216 = memref.load %arg1[%c3] : memref<12xf32, #tpu.memory_space<smem>>
    %c3_16 = arith.constant 3 : index
    %217 = memref.load %arg2[%c3_16] : memref<12xf32, #tpu.memory_space<smem>>
    %218 = vector.broadcast %216 : f32 to vector<1x128xf32>
    %219 = arith.mulf %180, %218 : vector<1x128xf32>
    %220 = vector.broadcast %217 : f32 to vector<1x128xf32>
    %221 = arith.mulf %185, %220 : vector<1x128xf32>
    %222 = arith.addf %219, %221 : vector<1x128xf32>
    %223 = vector.broadcast %216 : f32 to vector<1x128xf32>
    %224 = arith.mulf %185, %223 : vector<1x128xf32>
    %225 = vector.broadcast %217 : f32 to vector<1x128xf32>
    %226 = arith.mulf %180, %225 : vector<1x128xf32>
    %227 = arith.subf %224, %226 : vector<1x128xf32>
    %228 = vector.broadcast %216 : f32 to vector<1x128xf32>
    %229 = arith.mulf %190, %228 : vector<1x128xf32>
    %230 = vector.broadcast %217 : f32 to vector<1x128xf32>
    %231 = arith.mulf %195, %230 : vector<1x128xf32>
    %232 = arith.subf %229, %231 : vector<1x128xf32>
    %233 = vector.broadcast %216 : f32 to vector<1x128xf32>
    %234 = arith.mulf %195, %233 : vector<1x128xf32>
    %235 = vector.broadcast %217 : f32 to vector<1x128xf32>
    %236 = arith.mulf %190, %235 : vector<1x128xf32>
    %237 = arith.addf %234, %236 : vector<1x128xf32>
    %238 = vector.broadcast %216 : f32 to vector<1x128xf32>
    %239 = arith.mulf %200, %238 : vector<1x128xf32>
    %240 = vector.broadcast %217 : f32 to vector<1x128xf32>
    %241 = arith.mulf %205, %240 : vector<1x128xf32>
    %242 = arith.addf %239, %241 : vector<1x128xf32>
    %243 = vector.broadcast %216 : f32 to vector<1x128xf32>
    %244 = arith.mulf %205, %243 : vector<1x128xf32>
    %245 = vector.broadcast %217 : f32 to vector<1x128xf32>
    %246 = arith.mulf %200, %245 : vector<1x128xf32>
    %247 = arith.subf %244, %246 : vector<1x128xf32>
    %248 = vector.broadcast %216 : f32 to vector<1x128xf32>
    %249 = arith.mulf %210, %248 : vector<1x128xf32>
    %250 = vector.broadcast %217 : f32 to vector<1x128xf32>
    %251 = arith.mulf %215, %250 : vector<1x128xf32>
    %252 = arith.subf %249, %251 : vector<1x128xf32>
    %253 = vector.broadcast %216 : f32 to vector<1x128xf32>
    %254 = arith.mulf %215, %253 : vector<1x128xf32>
    %255 = vector.broadcast %217 : f32 to vector<1x128xf32>
    %256 = arith.mulf %210, %255 : vector<1x128xf32>
    %257 = arith.addf %254, %256 : vector<1x128xf32>
    %258 = arith.mulf %14, %222 : vector<1x128xf32>
    %259 = arith.mulf %17, %252 : vector<1x128xf32>
    %260 = arith.subf %258, %259 : vector<1x128xf32>
    %261 = arith.mulf %14, %227 : vector<1x128xf32>
    %262 = arith.mulf %17, %257 : vector<1x128xf32>
    %263 = arith.subf %261, %262 : vector<1x128xf32>
    %264 = arith.mulf %17, %222 : vector<1x128xf32>
    %265 = arith.mulf %14, %252 : vector<1x128xf32>
    %266 = arith.addf %264, %265 : vector<1x128xf32>
    %267 = arith.mulf %17, %227 : vector<1x128xf32>
    %268 = arith.mulf %14, %257 : vector<1x128xf32>
    %269 = arith.addf %267, %268 : vector<1x128xf32>
    %270 = arith.mulf %14, %232 : vector<1x128xf32>
    %271 = arith.mulf %17, %242 : vector<1x128xf32>
    %272 = arith.subf %270, %271 : vector<1x128xf32>
    %273 = arith.mulf %14, %237 : vector<1x128xf32>
    %274 = arith.mulf %17, %247 : vector<1x128xf32>
    %275 = arith.subf %273, %274 : vector<1x128xf32>
    %276 = arith.mulf %17, %232 : vector<1x128xf32>
    %277 = arith.mulf %14, %242 : vector<1x128xf32>
    %278 = arith.addf %276, %277 : vector<1x128xf32>
    %279 = arith.mulf %17, %237 : vector<1x128xf32>
    %280 = arith.mulf %14, %247 : vector<1x128xf32>
    %281 = arith.addf %279, %280 : vector<1x128xf32>
    %282 = arith.mulf %32, %260 : vector<1x128xf32>
    %283 = arith.mulf %35, %272 : vector<1x128xf32>
    %284 = arith.subf %282, %283 : vector<1x128xf32>
    %285 = arith.mulf %32, %263 : vector<1x128xf32>
    %286 = arith.mulf %35, %275 : vector<1x128xf32>
    %287 = arith.subf %285, %286 : vector<1x128xf32>
    %288 = arith.mulf %35, %260 : vector<1x128xf32>
    %289 = arith.mulf %32, %272 : vector<1x128xf32>
    %290 = arith.addf %288, %289 : vector<1x128xf32>
    %291 = arith.mulf %35, %263 : vector<1x128xf32>
    %292 = arith.mulf %32, %275 : vector<1x128xf32>
    %293 = arith.addf %291, %292 : vector<1x128xf32>
    %294 = arith.mulf %32, %266 : vector<1x128xf32>
    %295 = arith.mulf %35, %278 : vector<1x128xf32>
    %296 = arith.subf %294, %295 : vector<1x128xf32>
    %297 = arith.mulf %32, %269 : vector<1x128xf32>
    %298 = arith.mulf %35, %281 : vector<1x128xf32>
    %299 = arith.subf %297, %298 : vector<1x128xf32>
    %300 = arith.mulf %35, %266 : vector<1x128xf32>
    %301 = arith.mulf %32, %278 : vector<1x128xf32>
    %302 = arith.addf %300, %301 : vector<1x128xf32>
    %303 = arith.mulf %35, %269 : vector<1x128xf32>
    %304 = arith.mulf %32, %281 : vector<1x128xf32>
    %305 = arith.addf %303, %304 : vector<1x128xf32>
    %c4 = arith.constant 4 : index
    %306 = memref.load %arg1[%c4] : memref<12xf32, #tpu.memory_space<smem>>
    %c4_17 = arith.constant 4 : index
    %307 = memref.load %arg2[%c4_17] : memref<12xf32, #tpu.memory_space<smem>>
    %308 = vector.broadcast %306 : f32 to vector<1x128xf32>
    %309 = arith.mulf %308, %284 : vector<1x128xf32>
    %310 = vector.broadcast %307 : f32 to vector<1x128xf32>
    %311 = arith.mulf %310, %302 : vector<1x128xf32>
    %312 = arith.subf %309, %311 : vector<1x128xf32>
    %313 = vector.broadcast %306 : f32 to vector<1x128xf32>
    %314 = arith.mulf %313, %287 : vector<1x128xf32>
    %315 = vector.broadcast %307 : f32 to vector<1x128xf32>
    %316 = arith.mulf %315, %305 : vector<1x128xf32>
    %317 = arith.subf %314, %316 : vector<1x128xf32>
    %318 = vector.broadcast %307 : f32 to vector<1x128xf32>
    %319 = arith.mulf %318, %284 : vector<1x128xf32>
    %320 = vector.broadcast %306 : f32 to vector<1x128xf32>
    %321 = arith.mulf %320, %302 : vector<1x128xf32>
    %322 = arith.addf %319, %321 : vector<1x128xf32>
    %323 = vector.broadcast %307 : f32 to vector<1x128xf32>
    %324 = arith.mulf %323, %287 : vector<1x128xf32>
    %325 = vector.broadcast %306 : f32 to vector<1x128xf32>
    %326 = arith.mulf %325, %305 : vector<1x128xf32>
    %327 = arith.addf %324, %326 : vector<1x128xf32>
    %328 = vector.broadcast %306 : f32 to vector<1x128xf32>
    %329 = arith.mulf %328, %290 : vector<1x128xf32>
    %330 = vector.broadcast %307 : f32 to vector<1x128xf32>
    %331 = arith.mulf %330, %296 : vector<1x128xf32>
    %332 = arith.subf %329, %331 : vector<1x128xf32>
    %333 = vector.broadcast %306 : f32 to vector<1x128xf32>
    %334 = arith.mulf %333, %293 : vector<1x128xf32>
    %335 = vector.broadcast %307 : f32 to vector<1x128xf32>
    %336 = arith.mulf %335, %299 : vector<1x128xf32>
    %337 = arith.subf %334, %336 : vector<1x128xf32>
    %338 = vector.broadcast %307 : f32 to vector<1x128xf32>
    %339 = arith.mulf %338, %290 : vector<1x128xf32>
    %340 = vector.broadcast %306 : f32 to vector<1x128xf32>
    %341 = arith.mulf %340, %296 : vector<1x128xf32>
    %342 = arith.addf %339, %341 : vector<1x128xf32>
    %343 = vector.broadcast %307 : f32 to vector<1x128xf32>
    %344 = arith.mulf %343, %293 : vector<1x128xf32>
    %345 = vector.broadcast %306 : f32 to vector<1x128xf32>
    %346 = arith.mulf %345, %299 : vector<1x128xf32>
    %347 = arith.addf %344, %346 : vector<1x128xf32>
    %c5 = arith.constant 5 : index
    %348 = memref.load %arg1[%c5] : memref<12xf32, #tpu.memory_space<smem>>
    %c5_18 = arith.constant 5 : index
    %349 = memref.load %arg2[%c5_18] : memref<12xf32, #tpu.memory_space<smem>>
    %350 = vector.broadcast %348 : f32 to vector<1x128xf32>
    %351 = arith.mulf %312, %350 : vector<1x128xf32>
    %352 = vector.broadcast %349 : f32 to vector<1x128xf32>
    %353 = arith.mulf %317, %352 : vector<1x128xf32>
    %354 = arith.addf %351, %353 : vector<1x128xf32>
    %355 = vector.broadcast %348 : f32 to vector<1x128xf32>
    %356 = arith.mulf %317, %355 : vector<1x128xf32>
    %357 = vector.broadcast %349 : f32 to vector<1x128xf32>
    %358 = arith.mulf %312, %357 : vector<1x128xf32>
    %359 = arith.subf %356, %358 : vector<1x128xf32>
    %360 = vector.broadcast %348 : f32 to vector<1x128xf32>
    %361 = arith.mulf %322, %360 : vector<1x128xf32>
    %362 = vector.broadcast %349 : f32 to vector<1x128xf32>
    %363 = arith.mulf %327, %362 : vector<1x128xf32>
    %364 = arith.subf %361, %363 : vector<1x128xf32>
    %365 = vector.broadcast %348 : f32 to vector<1x128xf32>
    %366 = arith.mulf %327, %365 : vector<1x128xf32>
    %367 = vector.broadcast %349 : f32 to vector<1x128xf32>
    %368 = arith.mulf %322, %367 : vector<1x128xf32>
    %369 = arith.addf %366, %368 : vector<1x128xf32>
    %370 = vector.broadcast %348 : f32 to vector<1x128xf32>
    %371 = arith.mulf %332, %370 : vector<1x128xf32>
    %372 = vector.broadcast %349 : f32 to vector<1x128xf32>
    %373 = arith.mulf %337, %372 : vector<1x128xf32>
    %374 = arith.addf %371, %373 : vector<1x128xf32>
    %375 = vector.broadcast %348 : f32 to vector<1x128xf32>
    %376 = arith.mulf %337, %375 : vector<1x128xf32>
    %377 = vector.broadcast %349 : f32 to vector<1x128xf32>
    %378 = arith.mulf %332, %377 : vector<1x128xf32>
    %379 = arith.subf %376, %378 : vector<1x128xf32>
    %380 = vector.broadcast %348 : f32 to vector<1x128xf32>
    %381 = arith.mulf %342, %380 : vector<1x128xf32>
    %382 = vector.broadcast %349 : f32 to vector<1x128xf32>
    %383 = arith.mulf %347, %382 : vector<1x128xf32>
    %384 = arith.subf %381, %383 : vector<1x128xf32>
    %385 = vector.broadcast %348 : f32 to vector<1x128xf32>
    %386 = arith.mulf %347, %385 : vector<1x128xf32>
    %387 = vector.broadcast %349 : f32 to vector<1x128xf32>
    %388 = arith.mulf %342, %387 : vector<1x128xf32>
    %389 = arith.addf %386, %388 : vector<1x128xf32>
    %c6 = arith.constant 6 : index
    %390 = memref.load %arg1[%c6] : memref<12xf32, #tpu.memory_space<smem>>
    %c6_19 = arith.constant 6 : index
    %391 = memref.load %arg2[%c6_19] : memref<12xf32, #tpu.memory_space<smem>>
    %392 = vector.broadcast %390 : f32 to vector<1x128xf32>
    %393 = arith.mulf %392, %354 : vector<1x128xf32>
    %394 = vector.broadcast %391 : f32 to vector<1x128xf32>
    %395 = arith.mulf %394, %374 : vector<1x128xf32>
    %396 = arith.subf %393, %395 : vector<1x128xf32>
    %397 = vector.broadcast %390 : f32 to vector<1x128xf32>
    %398 = arith.mulf %397, %359 : vector<1x128xf32>
    %399 = vector.broadcast %391 : f32 to vector<1x128xf32>
    %400 = arith.mulf %399, %379 : vector<1x128xf32>
    %401 = arith.subf %398, %400 : vector<1x128xf32>
    %402 = vector.broadcast %391 : f32 to vector<1x128xf32>
    %403 = arith.mulf %402, %354 : vector<1x128xf32>
    %404 = vector.broadcast %390 : f32 to vector<1x128xf32>
    %405 = arith.mulf %404, %374 : vector<1x128xf32>
    %406 = arith.addf %403, %405 : vector<1x128xf32>
    %407 = vector.broadcast %391 : f32 to vector<1x128xf32>
    %408 = arith.mulf %407, %359 : vector<1x128xf32>
    %409 = vector.broadcast %390 : f32 to vector<1x128xf32>
    %410 = arith.mulf %409, %379 : vector<1x128xf32>
    %411 = arith.addf %408, %410 : vector<1x128xf32>
    %412 = vector.broadcast %390 : f32 to vector<1x128xf32>
    %413 = arith.mulf %412, %364 : vector<1x128xf32>
    %414 = vector.broadcast %391 : f32 to vector<1x128xf32>
    %415 = arith.mulf %414, %384 : vector<1x128xf32>
    %416 = arith.subf %413, %415 : vector<1x128xf32>
    %417 = vector.broadcast %390 : f32 to vector<1x128xf32>
    %418 = arith.mulf %417, %369 : vector<1x128xf32>
    %419 = vector.broadcast %391 : f32 to vector<1x128xf32>
    %420 = arith.mulf %419, %389 : vector<1x128xf32>
    %421 = arith.subf %418, %420 : vector<1x128xf32>
    %422 = vector.broadcast %391 : f32 to vector<1x128xf32>
    %423 = arith.mulf %422, %364 : vector<1x128xf32>
    %424 = vector.broadcast %390 : f32 to vector<1x128xf32>
    %425 = arith.mulf %424, %384 : vector<1x128xf32>
    %426 = arith.addf %423, %425 : vector<1x128xf32>
    %427 = vector.broadcast %391 : f32 to vector<1x128xf32>
    %428 = arith.mulf %427, %369 : vector<1x128xf32>
    %429 = vector.broadcast %390 : f32 to vector<1x128xf32>
    %430 = arith.mulf %429, %389 : vector<1x128xf32>
    %431 = arith.addf %428, %430 : vector<1x128xf32>
    %c7 = arith.constant 7 : index
    %432 = memref.load %arg1[%c7] : memref<12xf32, #tpu.memory_space<smem>>
    %c7_20 = arith.constant 7 : index
    %433 = memref.load %arg2[%c7_20] : memref<12xf32, #tpu.memory_space<smem>>
    %434 = vector.broadcast %432 : f32 to vector<1x128xf32>
    %435 = arith.mulf %396, %434 : vector<1x128xf32>
    %436 = vector.broadcast %433 : f32 to vector<1x128xf32>
    %437 = arith.mulf %401, %436 : vector<1x128xf32>
    %438 = arith.addf %435, %437 : vector<1x128xf32>
    %439 = vector.broadcast %432 : f32 to vector<1x128xf32>
    %440 = arith.mulf %401, %439 : vector<1x128xf32>
    %441 = vector.broadcast %433 : f32 to vector<1x128xf32>
    %442 = arith.mulf %396, %441 : vector<1x128xf32>
    %443 = arith.subf %440, %442 : vector<1x128xf32>
    %444 = vector.broadcast %432 : f32 to vector<1x128xf32>
    %445 = arith.mulf %406, %444 : vector<1x128xf32>
    %446 = vector.broadcast %433 : f32 to vector<1x128xf32>
    %447 = arith.mulf %411, %446 : vector<1x128xf32>
    %448 = arith.subf %445, %447 : vector<1x128xf32>
    %449 = vector.broadcast %432 : f32 to vector<1x128xf32>
    %450 = arith.mulf %411, %449 : vector<1x128xf32>
    %451 = vector.broadcast %433 : f32 to vector<1x128xf32>
    %452 = arith.mulf %406, %451 : vector<1x128xf32>
    %453 = arith.addf %450, %452 : vector<1x128xf32>
    %454 = vector.broadcast %432 : f32 to vector<1x128xf32>
    %455 = arith.mulf %416, %454 : vector<1x128xf32>
    %456 = vector.broadcast %433 : f32 to vector<1x128xf32>
    %457 = arith.mulf %421, %456 : vector<1x128xf32>
    %458 = arith.addf %455, %457 : vector<1x128xf32>
    %459 = vector.broadcast %432 : f32 to vector<1x128xf32>
    %460 = arith.mulf %421, %459 : vector<1x128xf32>
    %461 = vector.broadcast %433 : f32 to vector<1x128xf32>
    %462 = arith.mulf %416, %461 : vector<1x128xf32>
    %463 = arith.subf %460, %462 : vector<1x128xf32>
    %464 = vector.broadcast %432 : f32 to vector<1x128xf32>
    %465 = arith.mulf %426, %464 : vector<1x128xf32>
    %466 = vector.broadcast %433 : f32 to vector<1x128xf32>
    %467 = arith.mulf %431, %466 : vector<1x128xf32>
    %468 = arith.subf %465, %467 : vector<1x128xf32>
    %469 = vector.broadcast %432 : f32 to vector<1x128xf32>
    %470 = arith.mulf %431, %469 : vector<1x128xf32>
    %471 = vector.broadcast %433 : f32 to vector<1x128xf32>
    %472 = arith.mulf %426, %471 : vector<1x128xf32>
    %473 = arith.addf %470, %472 : vector<1x128xf32>
    %474 = arith.mulf %20, %438 : vector<1x128xf32>
    %475 = arith.mulf %23, %468 : vector<1x128xf32>
    %476 = arith.subf %474, %475 : vector<1x128xf32>
    %477 = arith.mulf %20, %443 : vector<1x128xf32>
    %478 = arith.mulf %23, %473 : vector<1x128xf32>
    %479 = arith.subf %477, %478 : vector<1x128xf32>
    %480 = arith.mulf %23, %438 : vector<1x128xf32>
    %481 = arith.mulf %20, %468 : vector<1x128xf32>
    %482 = arith.addf %480, %481 : vector<1x128xf32>
    %483 = arith.mulf %23, %443 : vector<1x128xf32>
    %484 = arith.mulf %20, %473 : vector<1x128xf32>
    %485 = arith.addf %483, %484 : vector<1x128xf32>
    %486 = arith.mulf %20, %448 : vector<1x128xf32>
    %487 = arith.mulf %23, %458 : vector<1x128xf32>
    %488 = arith.subf %486, %487 : vector<1x128xf32>
    %489 = arith.mulf %20, %453 : vector<1x128xf32>
    %490 = arith.mulf %23, %463 : vector<1x128xf32>
    %491 = arith.subf %489, %490 : vector<1x128xf32>
    %492 = arith.mulf %23, %448 : vector<1x128xf32>
    %493 = arith.mulf %20, %458 : vector<1x128xf32>
    %494 = arith.addf %492, %493 : vector<1x128xf32>
    %495 = arith.mulf %23, %453 : vector<1x128xf32>
    %496 = arith.mulf %20, %463 : vector<1x128xf32>
    %497 = arith.addf %495, %496 : vector<1x128xf32>
    %498 = arith.mulf %38, %476 : vector<1x128xf32>
    %499 = arith.mulf %41, %488 : vector<1x128xf32>
    %500 = arith.subf %498, %499 : vector<1x128xf32>
    %501 = arith.mulf %38, %479 : vector<1x128xf32>
    %502 = arith.mulf %41, %491 : vector<1x128xf32>
    %503 = arith.subf %501, %502 : vector<1x128xf32>
    %504 = arith.mulf %41, %476 : vector<1x128xf32>
    %505 = arith.mulf %38, %488 : vector<1x128xf32>
    %506 = arith.addf %504, %505 : vector<1x128xf32>
    %507 = arith.mulf %41, %479 : vector<1x128xf32>
    %508 = arith.mulf %38, %491 : vector<1x128xf32>
    %509 = arith.addf %507, %508 : vector<1x128xf32>
    %510 = arith.mulf %38, %482 : vector<1x128xf32>
    %511 = arith.mulf %41, %494 : vector<1x128xf32>
    %512 = arith.subf %510, %511 : vector<1x128xf32>
    %513 = arith.mulf %38, %485 : vector<1x128xf32>
    %514 = arith.mulf %41, %497 : vector<1x128xf32>
    %515 = arith.subf %513, %514 : vector<1x128xf32>
    %516 = arith.mulf %41, %482 : vector<1x128xf32>
    %517 = arith.mulf %38, %494 : vector<1x128xf32>
    %518 = arith.addf %516, %517 : vector<1x128xf32>
    %519 = arith.mulf %41, %485 : vector<1x128xf32>
    %520 = arith.mulf %38, %497 : vector<1x128xf32>
    %521 = arith.addf %519, %520 : vector<1x128xf32>
    %c8 = arith.constant 8 : index
    %522 = memref.load %arg1[%c8] : memref<12xf32, #tpu.memory_space<smem>>
    %c8_21 = arith.constant 8 : index
    %523 = memref.load %arg2[%c8_21] : memref<12xf32, #tpu.memory_space<smem>>
    %524 = vector.broadcast %522 : f32 to vector<1x128xf32>
    %525 = arith.mulf %524, %500 : vector<1x128xf32>
    %526 = vector.broadcast %523 : f32 to vector<1x128xf32>
    %527 = arith.mulf %526, %518 : vector<1x128xf32>
    %528 = arith.subf %525, %527 : vector<1x128xf32>
    %529 = vector.broadcast %522 : f32 to vector<1x128xf32>
    %530 = arith.mulf %529, %503 : vector<1x128xf32>
    %531 = vector.broadcast %523 : f32 to vector<1x128xf32>
    %532 = arith.mulf %531, %521 : vector<1x128xf32>
    %533 = arith.subf %530, %532 : vector<1x128xf32>
    %534 = vector.broadcast %523 : f32 to vector<1x128xf32>
    %535 = arith.mulf %534, %500 : vector<1x128xf32>
    %536 = vector.broadcast %522 : f32 to vector<1x128xf32>
    %537 = arith.mulf %536, %518 : vector<1x128xf32>
    %538 = arith.addf %535, %537 : vector<1x128xf32>
    %539 = vector.broadcast %523 : f32 to vector<1x128xf32>
    %540 = arith.mulf %539, %503 : vector<1x128xf32>
    %541 = vector.broadcast %522 : f32 to vector<1x128xf32>
    %542 = arith.mulf %541, %521 : vector<1x128xf32>
    %543 = arith.addf %540, %542 : vector<1x128xf32>
    %544 = vector.broadcast %522 : f32 to vector<1x128xf32>
    %545 = arith.mulf %544, %506 : vector<1x128xf32>
    %546 = vector.broadcast %523 : f32 to vector<1x128xf32>
    %547 = arith.mulf %546, %512 : vector<1x128xf32>
    %548 = arith.subf %545, %547 : vector<1x128xf32>
    %549 = vector.broadcast %522 : f32 to vector<1x128xf32>
    %550 = arith.mulf %549, %509 : vector<1x128xf32>
    %551 = vector.broadcast %523 : f32 to vector<1x128xf32>
    %552 = arith.mulf %551, %515 : vector<1x128xf32>
    %553 = arith.subf %550, %552 : vector<1x128xf32>
    %554 = vector.broadcast %523 : f32 to vector<1x128xf32>
    %555 = arith.mulf %554, %506 : vector<1x128xf32>
    %556 = vector.broadcast %522 : f32 to vector<1x128xf32>
    %557 = arith.mulf %556, %512 : vector<1x128xf32>
    %558 = arith.addf %555, %557 : vector<1x128xf32>
    %559 = vector.broadcast %523 : f32 to vector<1x128xf32>
    %560 = arith.mulf %559, %509 : vector<1x128xf32>
    %561 = vector.broadcast %522 : f32 to vector<1x128xf32>
    %562 = arith.mulf %561, %515 : vector<1x128xf32>
    %563 = arith.addf %560, %562 : vector<1x128xf32>
    %c9 = arith.constant 9 : index
    %564 = memref.load %arg1[%c9] : memref<12xf32, #tpu.memory_space<smem>>
    %c9_22 = arith.constant 9 : index
    %565 = memref.load %arg2[%c9_22] : memref<12xf32, #tpu.memory_space<smem>>
    %566 = vector.broadcast %564 : f32 to vector<1x128xf32>
    %567 = arith.mulf %528, %566 : vector<1x128xf32>
    %568 = vector.broadcast %565 : f32 to vector<1x128xf32>
    %569 = arith.mulf %533, %568 : vector<1x128xf32>
    %570 = arith.addf %567, %569 : vector<1x128xf32>
    %571 = vector.broadcast %564 : f32 to vector<1x128xf32>
    %572 = arith.mulf %533, %571 : vector<1x128xf32>
    %573 = vector.broadcast %565 : f32 to vector<1x128xf32>
    %574 = arith.mulf %528, %573 : vector<1x128xf32>
    %575 = arith.subf %572, %574 : vector<1x128xf32>
    %576 = vector.broadcast %564 : f32 to vector<1x128xf32>
    %577 = arith.mulf %538, %576 : vector<1x128xf32>
    %578 = vector.broadcast %565 : f32 to vector<1x128xf32>
    %579 = arith.mulf %543, %578 : vector<1x128xf32>
    %580 = arith.subf %577, %579 : vector<1x128xf32>
    %581 = vector.broadcast %564 : f32 to vector<1x128xf32>
    %582 = arith.mulf %543, %581 : vector<1x128xf32>
    %583 = vector.broadcast %565 : f32 to vector<1x128xf32>
    %584 = arith.mulf %538, %583 : vector<1x128xf32>
    %585 = arith.addf %582, %584 : vector<1x128xf32>
    %586 = vector.broadcast %564 : f32 to vector<1x128xf32>
    %587 = arith.mulf %548, %586 : vector<1x128xf32>
    %588 = vector.broadcast %565 : f32 to vector<1x128xf32>
    %589 = arith.mulf %553, %588 : vector<1x128xf32>
    %590 = arith.addf %587, %589 : vector<1x128xf32>
    %591 = vector.broadcast %564 : f32 to vector<1x128xf32>
    %592 = arith.mulf %553, %591 : vector<1x128xf32>
    %593 = vector.broadcast %565 : f32 to vector<1x128xf32>
    %594 = arith.mulf %548, %593 : vector<1x128xf32>
    %595 = arith.subf %592, %594 : vector<1x128xf32>
    %596 = vector.broadcast %564 : f32 to vector<1x128xf32>
    %597 = arith.mulf %558, %596 : vector<1x128xf32>
    %598 = vector.broadcast %565 : f32 to vector<1x128xf32>
    %599 = arith.mulf %563, %598 : vector<1x128xf32>
    %600 = arith.subf %597, %599 : vector<1x128xf32>
    %601 = vector.broadcast %564 : f32 to vector<1x128xf32>
    %602 = arith.mulf %563, %601 : vector<1x128xf32>
    %603 = vector.broadcast %565 : f32 to vector<1x128xf32>
    %604 = arith.mulf %558, %603 : vector<1x128xf32>
    %605 = arith.addf %602, %604 : vector<1x128xf32>
    %c10 = arith.constant 10 : index
    %606 = memref.load %arg1[%c10] : memref<12xf32, #tpu.memory_space<smem>>
    %c10_23 = arith.constant 10 : index
    %607 = memref.load %arg2[%c10_23] : memref<12xf32, #tpu.memory_space<smem>>
    %608 = vector.broadcast %606 : f32 to vector<1x128xf32>
    %609 = arith.mulf %608, %570 : vector<1x128xf32>
    %610 = vector.broadcast %607 : f32 to vector<1x128xf32>
    %611 = arith.mulf %610, %590 : vector<1x128xf32>
    %612 = arith.subf %609, %611 : vector<1x128xf32>
    %613 = vector.broadcast %606 : f32 to vector<1x128xf32>
    %614 = arith.mulf %613, %575 : vector<1x128xf32>
    %615 = vector.broadcast %607 : f32 to vector<1x128xf32>
    %616 = arith.mulf %615, %595 : vector<1x128xf32>
    %617 = arith.subf %614, %616 : vector<1x128xf32>
    %618 = vector.broadcast %607 : f32 to vector<1x128xf32>
    %619 = arith.mulf %618, %570 : vector<1x128xf32>
    %620 = vector.broadcast %606 : f32 to vector<1x128xf32>
    %621 = arith.mulf %620, %590 : vector<1x128xf32>
    %622 = arith.addf %619, %621 : vector<1x128xf32>
    %623 = vector.broadcast %607 : f32 to vector<1x128xf32>
    %624 = arith.mulf %623, %575 : vector<1x128xf32>
    %625 = vector.broadcast %606 : f32 to vector<1x128xf32>
    %626 = arith.mulf %625, %595 : vector<1x128xf32>
    %627 = arith.addf %624, %626 : vector<1x128xf32>
    %628 = vector.broadcast %606 : f32 to vector<1x128xf32>
    %629 = arith.mulf %628, %580 : vector<1x128xf32>
    %630 = vector.broadcast %607 : f32 to vector<1x128xf32>
    %631 = arith.mulf %630, %600 : vector<1x128xf32>
    %632 = arith.subf %629, %631 : vector<1x128xf32>
    %633 = vector.broadcast %606 : f32 to vector<1x128xf32>
    %634 = arith.mulf %633, %585 : vector<1x128xf32>
    %635 = vector.broadcast %607 : f32 to vector<1x128xf32>
    %636 = arith.mulf %635, %605 : vector<1x128xf32>
    %637 = arith.subf %634, %636 : vector<1x128xf32>
    %638 = vector.broadcast %607 : f32 to vector<1x128xf32>
    %639 = arith.mulf %638, %580 : vector<1x128xf32>
    %640 = vector.broadcast %606 : f32 to vector<1x128xf32>
    %641 = arith.mulf %640, %600 : vector<1x128xf32>
    %642 = arith.addf %639, %641 : vector<1x128xf32>
    %643 = vector.broadcast %607 : f32 to vector<1x128xf32>
    %644 = arith.mulf %643, %585 : vector<1x128xf32>
    %645 = vector.broadcast %606 : f32 to vector<1x128xf32>
    %646 = arith.mulf %645, %605 : vector<1x128xf32>
    %647 = arith.addf %644, %646 : vector<1x128xf32>
    %c11 = arith.constant 11 : index
    %648 = memref.load %arg1[%c11] : memref<12xf32, #tpu.memory_space<smem>>
    %c11_24 = arith.constant 11 : index
    %649 = memref.load %arg2[%c11_24] : memref<12xf32, #tpu.memory_space<smem>>
    %650 = vector.broadcast %648 : f32 to vector<1x128xf32>
    %651 = arith.mulf %612, %650 : vector<1x128xf32>
    %652 = vector.broadcast %649 : f32 to vector<1x128xf32>
    %653 = arith.mulf %617, %652 : vector<1x128xf32>
    %654 = arith.addf %651, %653 : vector<1x128xf32>
    %655 = vector.broadcast %648 : f32 to vector<1x128xf32>
    %656 = arith.mulf %617, %655 : vector<1x128xf32>
    %657 = vector.broadcast %649 : f32 to vector<1x128xf32>
    %658 = arith.mulf %612, %657 : vector<1x128xf32>
    %659 = arith.subf %656, %658 : vector<1x128xf32>
    %660 = vector.broadcast %648 : f32 to vector<1x128xf32>
    %661 = arith.mulf %622, %660 : vector<1x128xf32>
    %662 = vector.broadcast %649 : f32 to vector<1x128xf32>
    %663 = arith.mulf %627, %662 : vector<1x128xf32>
    %664 = arith.subf %661, %663 : vector<1x128xf32>
    %665 = vector.broadcast %648 : f32 to vector<1x128xf32>
    %666 = arith.mulf %627, %665 : vector<1x128xf32>
    %667 = vector.broadcast %649 : f32 to vector<1x128xf32>
    %668 = arith.mulf %622, %667 : vector<1x128xf32>
    %669 = arith.addf %666, %668 : vector<1x128xf32>
    %670 = vector.broadcast %648 : f32 to vector<1x128xf32>
    %671 = arith.mulf %632, %670 : vector<1x128xf32>
    %672 = vector.broadcast %649 : f32 to vector<1x128xf32>
    %673 = arith.mulf %637, %672 : vector<1x128xf32>
    %674 = arith.addf %671, %673 : vector<1x128xf32>
    %675 = vector.broadcast %648 : f32 to vector<1x128xf32>
    %676 = arith.mulf %637, %675 : vector<1x128xf32>
    %677 = vector.broadcast %649 : f32 to vector<1x128xf32>
    %678 = arith.mulf %632, %677 : vector<1x128xf32>
    %679 = arith.subf %676, %678 : vector<1x128xf32>
    %680 = vector.broadcast %648 : f32 to vector<1x128xf32>
    %681 = arith.mulf %642, %680 : vector<1x128xf32>
    %682 = vector.broadcast %649 : f32 to vector<1x128xf32>
    %683 = arith.mulf %647, %682 : vector<1x128xf32>
    %684 = arith.subf %681, %683 : vector<1x128xf32>
    %685 = vector.broadcast %648 : f32 to vector<1x128xf32>
    %686 = arith.mulf %647, %685 : vector<1x128xf32>
    %687 = vector.broadcast %649 : f32 to vector<1x128xf32>
    %688 = arith.mulf %642, %687 : vector<1x128xf32>
    %689 = arith.addf %686, %688 : vector<1x128xf32>
    %690 = arith.mulf %654, %654 : vector<1x128xf32>
    %691 = arith.mulf %659, %659 : vector<1x128xf32>
    %692 = arith.addf %690, %691 : vector<1x128xf32>
    %693 = arith.mulf %684, %684 : vector<1x128xf32>
    %694 = arith.mulf %689, %689 : vector<1x128xf32>
    %695 = arith.addf %693, %694 : vector<1x128xf32>
    %696 = arith.mulf %664, %664 : vector<1x128xf32>
    %697 = arith.mulf %669, %669 : vector<1x128xf32>
    %698 = arith.addf %696, %697 : vector<1x128xf32>
    %699 = arith.mulf %674, %674 : vector<1x128xf32>
    %700 = arith.mulf %679, %679 : vector<1x128xf32>
    %701 = arith.addf %699, %700 : vector<1x128xf32>
    %702 = arith.addf %692, %695 : vector<1x128xf32>
    %703 = arith.subf %702, %698 : vector<1x128xf32>
    %704 = arith.subf %703, %701 : vector<1x128xf32>
    %c0_25 = arith.constant 0 : index
    %c0_26 = arith.constant 0 : index
    %c0_27 = arith.constant 0 : index
    %705 = vector.load %arg4[%c0_25, %c0_26, %c0_27] : memref<2x1x128xf32, #tpu.memory_space<vmem>>, vector<1x1x128xf32>
    %706 = vector.shape_cast %705 : vector<1x1x128xf32> to vector<1x128xf32>
    %707 = vector.shape_cast %704 : vector<1x128xf32> to vector<1x1x128xf32>
    tpu.vector_store %arg4[%c0_25, %c0_26, %c0_27], %707 {strides = array<i32>} : memref<2x1x128xf32, #tpu.memory_space<vmem>>, vector<1x1x128xf32>,
    %708 = arith.subf %692, %695 : vector<1x128xf32>
    %709 = arith.addf %708, %698 : vector<1x128xf32>
    %710 = arith.subf %709, %701 : vector<1x128xf32>
    %c1_28 = arith.constant 1 : index
    %c0_29 = arith.constant 0 : index
    %c0_30 = arith.constant 0 : index
    %711 = vector.load %arg4[%c1_28, %c0_29, %c0_30] : memref<2x1x128xf32, #tpu.memory_space<vmem>>, vector<1x1x128xf32>
    %712 = vector.shape_cast %711 : vector<1x1x128xf32> to vector<1x128xf32>
    %713 = vector.shape_cast %710 : vector<1x128xf32> to vector<1x1x128xf32>
    tpu.vector_store %arg4[%c1_28, %c0_29, %c0_30], %713 {strides = array<i32>} : memref<2x1x128xf32, #tpu.memory_space<vmem>>, vector<1x1x128xf32>,
    return
  }
  func.func @transform_0(%arg0: i32, %arg1: memref<12xf32, #tpu.memory_space<smem>>, %arg2: memref<12xf32, #tpu.memory_space<smem>>) -> (i32, i32, i32) {
    %c0_i32 = arith.constant 0 : i32
    %c0_i32_0 = arith.constant 0 : i32
    %c0_i32_1 = arith.constant 0 : i32
    return %c0_i32, %arg0, %c0_i32_0 : i32, i32, i32
  }
  func.func @transform_1(%arg0: i32, %arg1: memref<12xf32, #tpu.memory_space<smem>>, %arg2: memref<12xf32, #tpu.memory_space<smem>>) -> (i32, i32, i32) {
    %c0_i32 = arith.constant 0 : i32
    %c0_i32_0 = arith.constant 0 : i32
    %c0_i32_1 = arith.constant 0 : i32
    return %c0_i32, %arg0, %c0_i32_0 : i32, i32, i32
  }
}

</mosaic_0001>

<bundles_post_ra>
// kernel: tpu_custom_call.1
= control target key start
LH: loop header
LB: loop body
LE: loop exit
PB: predicated region body
PF: predicated region fallthrough
CT: control target
= control target key end

     0   :  { %s1061_s12 = smov [#allocation3]   ;;  %s1603_s0 = inlined_call_operand.hbm [shape: f32[12], index: 0, kind: input, shape index: {}]   ;;  %s1604_s2 = inlined_call_operand.vmem [shape: f32[2,1,128], index: 2, kind: input, shape index: {}]   ;;  %s1605_s3 = inlined_call_operand.hbm [shape: f32[2,1,128], index: 3, kind: output, shape index: {}]   ;;  %s1606_s1 = inlined_call_operand.vmem [shape: f32[12], index: 1, kind: input, shape index: {}]  }
   0x1   :  { %9 = dma.hbm_to_smem %s1603_s0, 16, %s1061_s12, [#allocation2] }
   0x2   :  { %s10_s17 = sshll.u32 %s1606_s1, 4  ;;  %s11_s17 = int_to_ptr.vmem [resolvable:$true] %s10_s17 }
   0x3   :  { %s1025_s18 = scalar_lea.vmem %s11_s17, 16  ;;  %p1030_p1 = scmp.lt.s32.totalorder %s11_s17, %s11_s17 }
   0x4   :  { %p1026_p0 = scmp.ne.s32.totalorder %s11_s17, %s1025_s18  ;;  %p1031_p2 = scmp.lt.s32.totalorder %s1025_s18, %s1025_s18 }
   0x6   :  { %p1032_p3 = por %p1031_p2, %p1030_p1 }
   0x8   :  { %p1033_p4 = pnand %p1032_p3, %p1026_p0 }
   0xa   :  { %1036 = shalt.err (!%p1033_p4)  }
   0xb   :  { %s1062_s19 = smov [#allocation4]  }
   0xc   :  { %13 = dma.vmem_to_smem %s11_s17, 16, %s1062_s19, [#allocation2] }
   0xd   :  { %1057 = dma.done.wait [#allocation2], 32 }
   0xe   :  { %1058 = vsyncadd [#allocation2], 4294967264 }
   0xf   :  { %15 = sfence }
  0x10   :  { %16 = vsyncpa [#allocation6], 0  ;;  %v19_v0 = vld [vmem:[%s1604_s2] sm:$0x1]  ;;  %v951_v1 = vld [vmem:[%s1604_s2 + $0x1] sm:$0x1] }
  0x11   :  { %v1104_v2 = vmul.f32 0.5, %v19_v0  ;;  %v1106_v3 = vmul.f32 0.5, %v951_v1  ;;  %v1063_v26 = vmov 683565275   ;;  %v1064_v28 = vmov 2475754826  }
  0x12   :  { %v1065_v30 = vmov 2131351028   ;;  %v1066_v32 = vmov 2102212464   ;;  %v1067_v34 = vmov 920167782  }
  0x13   :  { %v23_v4 = vand.u32 2147483647, %v1104_v2  ;;  %v26_v5 = vand.u32 2139095040, %v1104_v2  ;;  %v242_v6 = vand.u32 2147483647, %v1106_v3  ;;  %v245_v7 = vand.u32 2139095040, %v1106_v3 }
  0x14   :  { %v1068_v42 = vmov 1326507024   ;;  %vm25_vm14 = vcmp.lt.s32.totalorder %v1104_v2, 0  ;;  %s1168_s2 = sld [smem:[#allocation3]]  ;;  %s1069_s18 = smov [#allocation5]  }
  0x15   :  { %v27_v8 = vshrl.u32 %v26_v5, 23  ;;  %v30_v9 = vand.u32 8388607, %v23_v4  ;;  %v246_v10 = vshrl.u32 %v245_v7, 23  ;;  %v249_v11 = vand.u32 8388607, %v242_v6 }
  0x16   :  { %vm1172_vm15 = vcmp.le.f32.partialorder %v23_v4, 0.7853982  ;;  %s1176_s22 = sld [smem:[#allocation4]]  ;;  %s940_s19 = sshll.u32 %s1069_s18, 4  ;;  %s941_s19 = int_to_ptr.vmem [resolvable:$true] %s940_s19 }
  0x17   :  { %v952_v12 = vadd.s32 4294967169, %v27_v8  ;;  %v960_v13 = vadd.s32 4294967169, %v246_v10  ;;  %v31_v15 = vor.u32 8388608, %v30_v9  ;;  %v250_v16 = vor.u32 8388608, %v249_v11  ;;  %s1178_s23 = sld [smem:[#allocation3 + $0x1]]  ;;  %s1037_s20 = scalar_lea.vmem %s941_s19, 32 }
  0x18   :  { %s1180_s24 = sld [smem:[#allocation4 + $0x1]]  ;;  %p1038_p5 = scmp.ne.s32.totalorder %s941_s19, %s1037_s20 }
  0x19   :  { %v33_v14 = vadd.s32 1, %v952_v12  ;;  %v252_v17 = vadd.s32 1, %v960_v13  ;;  %v1116_v22 = vshll.u32 %v31_v15, 8  ;;  %v1118_v24 = vshll.u32 %v250_v16, 8  ;;  %s1185_s25 = sld [smem:[#allocation3 + $0x2]]  ;;  %p1042_p6 = scmp.lt.s32.totalorder %s941_s19, %s941_s19 }
  0x1a   :  { %s1187_s26 = sld [smem:[#allocation4 + $0x2]]  ;;  %p1043_p7 = scmp.lt.s32.totalorder %s1037_s20, %s1037_s20 }
  0x1b   :  { %vm34_vm0 = vcmp.gt.s32.totalorder %v33_v14, 0  ;;  %vm253_vm1 = vcmp.gt.s32.totalorder %v252_v17, 0  ;;  %s1189_s27 = sld [smem:[#allocation3 + $0x3]] }
  0x1c   :  { %v35_v18 = vsel %vm34_vm0, %v33_v14, 0  ;;  %v254_v21 = vsel %vm253_vm1, %v252_v17, 0  ;;  %s1193_s28 = sld [smem:[#allocation4 + $0x3]]  ;;  %vm244_vm0 = vcmp.lt.s32.totalorder %v1106_v3, 0  ;;  %vm243_vm1 = vcmp.le.f32.partialorder %v242_v6, 0.7853982  ;;  %p1044_p8 = por %p1043_p7, %p1042_p6 }
  0x1d   :  { %v36_v19 = vshrl.u32 %v35_v18, 5  ;;  %v37_v20 = vand.u32 31, %v35_v18  ;;  %v256_v23 = vand.u32 31, %v254_v21  ;;  %v1120_v36 = vshrl.u32 %v254_v21, 5  ;;  %s1196_s29 = sld [smem:[#allocation3 + $0x4]] }
  0x1e   :  { %s1199_s30 = sld [smem:[#allocation4 + $0x4]]  ;;  %p1045_p9 = pnand %p1044_p8, %p1038_p5 }
  0x1f   :  { %v38_v25 = vsub.s32 32, %v37_v20  ;;  %v40_v27 = vshll.u32 %v1063_v26, %v37_v20  ;;  %v43_v29 = vshll.u32 %v1064_v28, %v37_v20  ;;  %v46_v31 = vshll.u32 %v1065_v30, %v37_v20  ;;  %s1203_s4 = sld [smem:[#allocation3 + $0x5]] }
  0x20   :  { %v49_v33 = vshll.u32 %v1066_v32, %v37_v20  ;;  %v52_v35 = vshll.u32 %v1067_v34, %v37_v20  ;;  %vm55_vm2 = vcmp.lt.s32.totalorder %v36_v19, 1  ;;  %vm56_vm3 = vcmp.lt.s32.totalorder %v36_v19, 2  ;;  %s1205_s5 = sld [smem:[#allocation4 + $0x5]] }
  0x21   :  { %v39_v37 = vshrl.u32 %v1063_v26, %v38_v25  ;;  %v41_v38 = vshrl.u32 %v1064_v28, %v38_v25  ;;  %v44_v39 = vshrl.u32 %v1065_v30, %v38_v25  ;;  %v47_v40 = vshrl.u32 %v1066_v32, %v38_v25  ;;  %s1208_s6 = sld [smem:[#allocation3 + $0x6]] }
  0x22   :  { %v50_v41 = vshrl.u32 %v1067_v34, %v38_v25  ;;  %v53_v43 = vshrl.u32 %v1068_v42, %v38_v25  ;;  %vm58_vm4 = vcmp.lt.s32.totalorder %v36_v19, 4  ;;  %v257_v47 = vsub.s32 32, %v256_v23  ;;  %s1211_s7 = sld [smem:[#allocation4 + $0x6]] }
  0x23   :  { %v42_v44 = vor.u32 %v41_v38, %v40_v27  ;;  %v45_v45 = vor.u32 %v44_v39, %v43_v29  ;;  %v48_v46 = vor.u32 %v47_v40, %v46_v31  ;;  %vm57_vm5 = vcmp.lt.s32.totalorder %v36_v19, 3  ;;  %s1213_s8 = sld [smem:[#allocation3 + $0x7]] }
  0x24   :  { %v51_v48 = vor.u32 %v50_v41, %v49_v33  ;;  %v54_v49 = vor.u32 %v53_v43, %v52_v35  ;;  %v259_v50 = vshll.u32 %v1063_v26, %v256_v23  ;;  %v262_v58 = vshll.u32 %v1064_v28, %v256_v23  ;;  %s1216_s9 = sld [smem:[#allocation4 + $0x7]] }
  0x25   :  { %v59_v51 = vsel %vm55_vm2, %v39_v37, %v42_v44  ;;  %v60_v52 = vsel %vm58_vm4, %v48_v46, 2102212464  ;;  %v63_v53 = vsel %vm55_vm2, %v42_v44, %v45_v45  ;;  %v67_v54 = vsel %vm55_vm2, %v45_v45, %v48_v46  ;;  %s1230_s10 = sld [smem:[#allocation3 + $0x8]] }
  0x26   :  { %v61_v55 = vsel %vm57_vm5, %v45_v45, %v60_v52  ;;  %v64_v56 = vsel %vm58_vm4, %v51_v48, 920167782  ;;  %v68_v57 = vsel %vm58_vm4, %v54_v49, 1326507024  ;;  %v258_v61 = vshrl.u32 %v1063_v26, %v257_v47  ;;  %s1244_s11 = sld [smem:[#allocation4 + $0x8]] }
  0x27   :  { %v65_v59 = vsel %vm57_vm5, %v48_v46, %v64_v56  ;;  %v69_v60 = vsel %vm57_vm5, %v51_v48, %v68_v57  ;;  %v260_v62 = vshrl.u32 %v1064_v28, %v257_v47  ;;  %v62_v63 = vsel %vm56_vm3, %v59_v51, %v61_v55  ;;  %s1252_s12 = sld [smem:[#allocation3 + $0x9]] }
  0x28   :  { %v66_v0 = vsel %vm56_vm3, %v63_v53, %v65_v59  ;;  %v70_v1 = vsel %vm56_vm3, %v67_v54, %v69_v60  ;;  %v263_v5 = vshrl.u32 %v1065_v30, %v257_v47  ;;  %v265_v13 = vshll.u32 %v1065_v30, %v256_v23  ;;  %s1257_s13 = sld [smem:[#allocation4 + $0x9]] }
  0x29   :  { %v1129_v7 = vmul.u32.u64.low %v1116_v22, %v70_v1  ;;  %v1130_v8 = vmul.u32.u64.high %v1116_v22, %v70_v1, %v1129_v7  ;;  %v1133_v9 = vmul.u32.u64.low %v1116_v22, %v66_v0  ;;  %v1134_v10 = vmul.u32.u64.high %v1116_v22, %v66_v0, %v1133_v9  ;;  %s1265_s14 = sld [smem:[#allocation3 + $0xa]] }
  0x2a   :  { %v261_v11 = vor.u32 %v260_v62, %v259_v50  ;;  %v264_v12 = vor.u32 %v263_v5, %v262_v58  ;;  %v266_v14 = vshrl.u32 %v1066_v32, %v257_v47  ;;  %v268_v15 = vshll.u32 %v1066_v32, %v256_v23  ;;  %s1267_s15 = sld [smem:[#allocation4 + $0xa]] }
  0x2b   :  { %v269_v16 = vshrl.u32 %v1067_v34, %v257_v47  ;;  %v271_v17 = vshll.u32 %v1067_v34, %v256_v23  ;;  %v272_v18 = vshrl.u32 %v1068_v42, %v257_v47  ;;  %v78_v19 = vmul.u32 %v1116_v22, %v62_v63  ;;  %s1276_s16 = sld [smem:[#allocation3 + $0xb]] }
  0x2c   :  { %v267_v20 = vor.u32 %v266_v14, %v265_v13  ;;  %vm274_vm6 = vcmp.lt.s32.totalorder %v1120_v36, 1  ;;  %vm275_vm7 = vcmp.lt.s32.totalorder %v1120_v36, 2  ;;  %vm80_vm8 = vc.u32 %v1130_v8, %v1133_v9  ;;  %s1291_s17 = sld [smem:[#allocation4 + $0xb]] }
  0x2d   :  { %v81_v21 = vadd.s32 1, %v1134_v10  ;;  %v270_v25 = vor.u32 %v269_v16, %v268_v15  ;;  %vm276_vm9 = vcmp.lt.s32.totalorder %v1120_v36, 3  ;;  %v273_v26 = vor.u32 %v272_v18, %v271_v17 }
  0x2e   :  { %vm277_vm10 = vcmp.lt.s32.totalorder %v1120_v36, 4  ;;  %v278_v27 = vsel %vm274_vm6, %v258_v61, %v261_v11  ;;  %v282_v23 = vsel %vm274_vm6, %v261_v11, %v264_v12  ;;  %v286_v30 = vsel %vm274_vm6, %v264_v12, %v267_v20 }
  0x2f   :  { %v82_v28 = vsel %vm80_vm8, %v81_v21, %v1134_v10  ;;  %v279_v22 = vsel %vm277_vm10, %v267_v20, 2102212464  ;;  %v283_v29 = vsel %vm277_vm10, %v270_v25, 920167782  ;;  %v287_v34 = vsel %vm277_vm10, %v273_v26, 1326507024 }
  0x30   :  { %v83_v31 = vadd.s32 %v82_v28, %v78_v19  ;;  %v280_v32 = vsel %vm276_vm9, %v264_v12, %v279_v22  ;;  %v284_v33 = vsel %vm276_vm9, %v267_v20, %v283_v29  ;;  %v288_v38 = vsel %vm276_vm9, %v270_v25, %v287_v34 }
  0x31   :  { %v281_v35 = vsel %vm275_vm7, %v278_v27, %v280_v32  ;;  %v285_v37 = vsel %vm275_vm7, %v282_v23, %v284_v33  ;;  %v289_v40 = vsel %vm275_vm7, %v286_v30, %v288_v38  ;;  %vm115_vm2 = vweird.f32 %v1104_v2 }
  0x32   :  { %v84_v39 = vadd.s32 536870912, %v83_v31  ;;  %v1151_v41 = vmul.u32.u64.low %v1118_v24, %v285_v37  ;;  %v1152_v42 = vmul.u32.u64.high %v1118_v24, %v285_v37, %v1151_v41  ;;  %v297_v46 = vmul.u32 %v1118_v24, %v281_v35 }
  0x33   :  { %v1155_v43 = vmul.u32.u64.low %v1118_v24, %v289_v40  ;;  %v1156_v44 = vmul.u32.u64.high %v1118_v24, %v289_v40, %v1155_v43  ;;  %v79_v24 = vadd.s32 %v1133_v9, %v1130_v8  ;;  %vm334_vm9 = vweird.f32 %v1106_v3 }
  0x34   :  { %v85_v45 = vshrl.u32 %v84_v39, 30  ;;  %v300_v48 = vadd.s32 1, %v1152_v42 }
  0x35   :  { %vm299_vm11 = vc.u32 %v1156_v44, %v1151_v41  ;;  %v298_v15 = vadd.s32 %v1151_v41, %v1156_v44  ;;  %v1219_v44 = vstv %s1168_s2 }
  0x36   :  { %v86_v47 = vshll.u32 %v85_v45, 30  ;;  %v301_v36 = vsel %vm299_vm11, %v300_v48, %v1152_v42  ;;  %v109_v20 = vsub.s32 4, %v85_v45  ;;  %v1233_v48 = vstv %s1185_s25 }
  0x37   :  { %v302_v50 = vadd.s32 %v301_v36, %v297_v46  ;;  %v1225_v46 = vstv %s1178_s23  ;;  %v1239_v36 = vstv %s1189_s27 }
  0x38   :  { %v87_v49 = vsub.s32 %v83_v31, %v86_v47  ;;  %v110_v29 = vsel %vm25_vm14, %v109_v20, %v85_v45  ;;  %v1222_v45 = vstv %s1176_s22  ;;  %v1228_v47 = vstv %s1180_s24 }
  0x39   :  { %v303_v52 = vadd.s32 536870912, %v302_v50  ;;  %v112_v33 = vsel %vm1172_vm15, 0, %v110_v29  ;;  %v1304_v29 = vstv %s1257_s13 }
  0x3a   :  { %v89_v51 = vsub.s32 0, %v87_v49  ;;  %v219_v37 = vadd.s32 3, %v112_v33  ;;  %v116_v6 = vand.u32 3, %v112_v33 }
  0x3b   :  { %v1162_v54 = vshrl.u32 %v303_v52, 30 }
  0x3c   :  { %v953_v53 = vmin.u32 %v89_v51, %v87_v49  ;;  %v220_v42 = vand.u32 3, %v219_v37  ;;  %vm121_vm3 = vcmp.eq.s32.totalorder %v116_v6, 2  ;;  %vm118_vm5 = vcmp.eq.s32.totalorder %v116_v6, 0 }
  0x3d   :  { %v305_v56 = vshll.u32 %v1162_v54, 30  ;;  %v328_v35 = vsub.s32 4, %v1162_v54  ;;  %vm117_vm7 = vcmp.lt.s32.totalorder %v116_v6, 2  ;;  %v1315_v37 = vstv %s1276_s16 }
  0x3e   :  { %v91_v55 = vclz %v953_v53  ;;  %vm225_vm4 = vcmp.eq.s32.totalorder %v220_v42, 2  ;;  %v1247_v53 = vstv %s1196_s29  ;;  %vm222_vm6 = vcmp.eq.s32.totalorder %v220_v42, 0 }
  0x3f   :  { %v306_v58 = vsub.s32 %v302_v50, %v305_v56  ;;  %v329_v40 = vsel %vm244_vm0, %v328_v35, %v1162_v54  ;;  %v1242_v50 = vstv %s1193_s28  ;;  %v1250_v56 = vstv %s1199_s30 }
  0x40   :  { %v954_v57 = vadd.s32 4294967294, %v91_v55  ;;  %v331_v43 = vsel %vm243_vm1, 0, %v329_v40  ;;  %vm221_vm8 = vcmp.lt.s32.totalorder %v220_v42, 2  ;;  %v1312_v35 = vstv %s1267_s15 }
  0x41   :  { %v308_v60 = vsub.s32 0, %v306_v58  ;;  %v438_v52 = vadd.s32 3, %v331_v43 }
  0x42   :  { %vm955_vm12 = vcmp.lt.s32.totalorder %v954_v57, 0 }
  0x43   :  { %v94_v59 = vsel %vm955_vm12, 0, %v954_v57  ;;  %v961_v0 = vmin.u32 %v308_v60, %v306_v58  ;;  %v1260_v60 = vstv %s1205_s5 }
  0x44   :  { %v95_v61 = vsub.s32 32, %v94_v59  ;;  %v96_v62 = vshll.u32 %v87_v49, %v94_v59  ;;  %v99_v63 = vsub.s32 4294967266, %v94_v59  ;;  %v1236_v49 = vstv %s1187_s26 }
  0x45   :  { %v310_v7 = vclz %v961_v0  ;;  %v335_v0 = vand.u32 3, %v331_v43 }
  0x46   :  { %v97_v1 = vshrl.u32 %v79_v24, %v95_v61  ;;  %v100_v5 = vadd.s32 127, %v99_v63  ;;  %v1263_v61 = vstv %s1208_s6 }
  0x47   :  { %v962_v12 = vadd.s32 4294967294, %v310_v7  ;;  %vm336_vm10 = vcmp.lt.s32.totalorder %v335_v0, 2  ;;  %vm337_vm11 = vcmp.eq.s32.totalorder %v335_v0, 0  ;;  %vm340_vm12 = vcmp.eq.s32.totalorder %v335_v0, 2 }
  0x48   :  { %v98_v10 = vor.u32 %v97_v1, %v96_v62  ;;  %v101_v11 = vshll.u32 %v100_v5, 23  ;;  %v439_v1 = vand.u32 3, %v438_v52 }
  0x49   :  { %vm963_vm13 = vcmp.lt.s32.totalorder %v962_v12, 0 }
  0x4a   :  { %v102_v13 = vor.u32 4788187, %v101_v11  ;;  %v105_v14 = vcvt.s32.f32 %v98_v10  ;;  %v313_v8 = vsel %vm963_vm13, 0, %v962_v12  ;;  %v1271_v10 = vstv %s1211_s7 }
  0x4b   :  { %v314_v9 = vsub.s32 32, %v313_v8  ;;  %v315_v17 = vshll.u32 %v306_v58, %v313_v8  ;;  %v318_v18 = vsub.s32 4294967266, %v313_v8  ;;  %v1255_v58 = vstv %s1203_s4 }
  0x4c   :  { %v103_v16 = vand.u32 2147483647, %v102_v13  ;;  %v1274_v11 = vstv %s1213_s8  ;;  %vm440_vm13 = vcmp.lt.s32.totalorder %v439_v1, 2 }
  0x4d   :  { %v316_v21 = vshrl.u32 %v298_v15, %v314_v9  ;;  %v319_v25 = vadd.s32 127, %v318_v18  ;;  %v1286_v15 = vstv %s1230_s10 }
  0x4e   :  { %v106_v19 = vmul.f32 %v105_v14, %v103_v16  ;;  %v1283_v14 = vstv %s1216_s9 }
  0x4f   :  { %v317_v23 = vor.u32 %v316_v21, %v315_v17  ;;  %v320_v28 = vshll.u32 %v319_v25, 23  ;;  %v1289_v17 = vstv %s1244_s11 }
  0x50   :  { %v107_v27 = vxor.u32 2147483648, %v106_v19 }
  0x51   :  { %v321_v31 = vor.u32 4788187, %v320_v28  ;;  %v324_v4 = vcvt.s32.f32 %v317_v23 }
  0x52   :  { %v108_v22 = vsel %vm25_vm14, %v107_v27, %v106_v19  ;;  %vm444_vm14 = vcmp.eq.s32.totalorder %v439_v1, 2  ;;  %v1298_v27 = vstv %s1252_s12 }
  0x53   :  { %v111_v30 = vsel %vm1172_vm15, %v1104_v2, %v108_v22  ;;  %v322_v32 = vand.u32 2147483647, %v321_v31  ;;  %vm441_vm15 = vcmp.eq.s32.totalorder %v439_v1, 0 }
  0x54   :  { %1009 = vcosq.f32 %v111_v30 }
  0x55   :  { %1011 = vsinq.f32 %v111_v30  ;;  %v325_v34 = vmul.f32 %v324_v4, %v322_v32 }
  0x57   :  { %v326_v38 = vxor.u32 2147483648, %v325_v34 }
  0x59   :  { %v327_v39 = vsel %vm244_vm0, %v326_v38, %v325_v34  ;;  %v1309_v34 = vstv %s1265_s14 }
  0x5a   :  { %v330_v41 = vsel %vm243_vm1, %v1106_v3, %v327_v39 }
  0x5b   :  { %1013 = vcosq.f32 %v330_v41 }
  0x5c   :  { %1015 = vsinq.f32 %v330_v41 }
  0x61   :  { %v1010_v51 = vpop.eup %1009 }
  0x62   :  { %v1012_v54 = vpop.eup %1011  ;;  %v122_v55 = vxor.u32 2147483648, %v1010_v51 }
  0x63   :  { %v119_v57 = vxor.u32 2147483648, %v1012_v54 }
  0x64   :  { %v123_v24 = vsel %vm121_vm3, %v122_v55, %v1012_v54  ;;  %v227_v59 = vsel %vm225_vm4, %v122_v55, %v1012_v54 }
  0x65   :  { %v120_v62 = vsel %vm118_vm5, %v1010_v51, %v119_v57  ;;  %v224_v63 = vsel %vm222_vm6, %v1010_v51, %v119_v57  ;;  %v1322_v51 = vstv %s1291_s17 }
  0x66   :  { %v124_v5 = vsel %vm117_vm7, %v120_v62, %v123_v24  ;;  %v228_v7 = vsel %vm221_vm8, %v224_v63, %v227_v59 }
  0x67   :  { %v125_v12 = vsel %vm115_vm2, nan, %v124_v5  ;;  %v229_v13 = vsel %vm115_vm2, nan, %v228_v7 }
  0x68   :  { %v230_v16 = vmul.f32 %v125_v12, %v125_v12  ;;  %v231_v8 = vmul.f32 %v229_v13, %v229_v13  ;;  %v233_v9 = vmul.f32 2.0, %v229_v13  ;;  %v1014_v18 = vpop.eup %1013  ;;  %v460_v20 = vmul.f32 0.0, %v229_v13 }
  0x69   :  { %v1016_v21 = vpop.eup %1015  ;;  %v341_v25 = vxor.u32 2147483648, %v1014_v18  ;;  %v462_v26 = vmul.f32 0.0, %v125_v12 }
  0x6a   :  { %v1293_v2 = vsub.f32 %v230_v16, %v231_v8  ;;  %v1295_v19 = vmul.f32 %v233_v9, %v125_v12  ;;  %v338_v31 = vxor.u32 2147483648, %v1016_v21  ;;  %v461_v33 = vsub.f32 %v125_v12, %v460_v20 }
  0x6b   :  { %v342_v4 = vsel %vm340_vm12, %v341_v25, %v1016_v21  ;;  %v446_v32 = vsel %vm444_vm14, %v341_v25, %v1016_v21  ;;  %v463_v40 = vsub.f32 %v462_v26, %v460_v20  ;;  %v464_v41 = vadd.f32 %v462_v26, %v229_v13 }
  0x6c   :  { %v235_v23 = vmul.f32 %v1293_v2, %v125_v12  ;;  %v236_v28 = vmul.f32 %v1295_v19, %v229_v13  ;;  %v238_v22 = vmul.f32 %v1295_v19, %v125_v12  ;;  %v239_v30 = vmul.f32 %v1293_v2, %v229_v13 }
  0x6d   :  { %v339_v38 = vsel %vm337_vm11, %v1014_v18, %v338_v31  ;;  %v443_v39 = vsel %vm441_vm15, %v1014_v18, %v338_v31  ;;  %v465_v43 = vadd.f32 %v462_v26, %v460_v20 }
  0x6e   :  { %v343_v6 = vsel %vm336_vm10, %v339_v38, %v342_v4  ;;  %v447_v42 = vsel %vm440_vm13, %v443_v39, %v446_v32  ;;  %v1324_v52 = vsub.f32 %v235_v23, %v236_v28  ;;  %v1326_v54 = vadd.f32 %v239_v30, %v238_v22 }
  0x6f   :  { %v344_v55 = vsel %vm334_vm9, nan, %v343_v6  ;;  %v448_v57 = vsel %vm334_vm9, nan, %v447_v42 }
  0x70   :  { %v449_v24 = vmul.f32 %v344_v55, %v344_v55  ;;  %v450_v59 = vmul.f32 %v448_v57, %v448_v57  ;;  %v452_v62 = vmul.f32 2.0, %v448_v57  ;;  %v466_v63 = vmul.f32 %v461_v33, %v344_v55 }
  0x71   :  { %v467_v0 = vmul.f32 %v463_v40, %v448_v57  ;;  %v469_v1 = vmul.f32 %v463_v40, %v344_v55  ;;  %v471_v5 = vmul.f32 %v461_v33, %v448_v57  ;;  %v474_v7 = vmul.f32 %v464_v41, %v344_v55 }
  0x72   :  { %v1332_v12 = vsub.f32 %v449_v24, %v450_v59  ;;  %v1334_v13 = vmul.f32 %v452_v62, %v344_v55  ;;  %v475_v16 = vmul.f32 %v465_v43, %v448_v57  ;;  %v477_v8 = vmul.f32 %v465_v43, %v344_v55 }
  0x73   :  { %v468_v9 = vsub.f32 %v466_v63, %v467_v0  ;;  %v470_v18 = vsub.f32 %v469_v1, %v467_v0  ;;  %v472_v20 = vadd.f32 %v471_v5, %v469_v1  ;;  %v473_v21 = vadd.f32 %v469_v1, %v467_v0 }
  0x74   :  { %v454_v3 = vmul.f32 %v1332_v12, %v344_v55  ;;  %v455_v25 = vmul.f32 %v1334_v13, %v448_v57  ;;  %v457_v26 = vmul.f32 %v1334_v13, %v344_v55  ;;  %v458_v23 = vmul.f32 %v1332_v12, %v448_v57 }
  0x75   :  { %v476_v28 = vsub.f32 %v474_v7, %v475_v16  ;;  %v478_v22 = vsub.f32 %v477_v8, %v475_v16  ;;  %v479_v30 = vmul.f32 %v464_v41, %v448_v57  ;;  %v481_v31 = vadd.f32 %v477_v8, %v475_v16 }
  0x76   :  { %v1340_v4 = vsub.f32 %v454_v3, %v455_v25  ;;  %v1342_v32 = vadd.f32 %v458_v23, %v457_v26  ;;  %v485_v33 = vmul.f32 %v1219_v44, %v468_v9  ;;  %v489_v38 = vmul.f32 %v1219_v44, %v470_v18 }
  0x77   :  { %v480_v39 = vadd.f32 %v479_v30, %v477_v8  ;;  %v490_v40 = vmul.f32 %v1222_v45, %v481_v31  ;;  %v492_v6 = vmul.f32 %v1222_v45, %v468_v9  ;;  %v495_v42 = vmul.f32 %v1222_v45, %v470_v18 }
  0x78   :  { %v496_v43 = vmul.f32 %v1219_v44, %v481_v31  ;;  %v498_v41 = vmul.f32 %v1219_v44, %v472_v20  ;;  %v499_v55 = vmul.f32 %v1222_v45, %v476_v28  ;;  %v501_v57 = vmul.f32 %v1219_v44, %v473_v21 }
  0x79   :  { %v487_v24 = vmul.f32 %v1222_v45, %v480_v39  ;;  %v491_v59 = vsub.f32 %v489_v38, %v490_v40  ;;  %v493_v62 = vmul.f32 %v1219_v44, %v480_v39  ;;  %v502_v63 = vmul.f32 %v1222_v45, %v478_v22 }
  0x7a   :  { %v497_v0 = vadd.f32 %v496_v43, %v495_v42  ;;  %v500_v1 = vsub.f32 %v498_v41, %v499_v55  ;;  %v504_v5 = vmul.f32 %v1222_v45, %v472_v20  ;;  %v505_v7 = vmul.f32 %v1219_v44, %v476_v28 }
  0x7b   :  { %v488_v16 = vsub.f32 %v485_v33, %v487_v24  ;;  %v494_v8 = vadd.f32 %v493_v62, %v492_v6  ;;  %v503_v9 = vsub.f32 %v501_v57, %v502_v63  ;;  %v507_v18 = vmul.f32 %v1222_v45, %v473_v21 }
  0x7c   :  { %v506_v3 = vadd.f32 %v505_v7, %v504_v5  ;;  %v508_v25 = vmul.f32 %v1219_v44, %v478_v22  ;;  %v515_v26 = vmul.f32 %v1228_v47, %v491_v59  ;;  %v517_v23 = vmul.f32 %v1225_v46, %v491_v59 }
  0x7d   :  { %v513_v30 = vmul.f32 %v1225_v46, %v488_v16  ;;  %v518_v31 = vmul.f32 %v1228_v47, %v488_v16  ;;  %v520_v20 = vmul.f32 %v1225_v46, %v494_v8  ;;  %v521_v28 = vmul.f32 %v1228_v47, %v497_v0 }
  0x7e   :  { %v509_v33 = vadd.f32 %v508_v25, %v507_v18  ;;  %v523_v38 = vmul.f32 %v1225_v46, %v497_v0  ;;  %v524_v45 = vmul.f32 %v1228_v47, %v494_v8  ;;  %v526_v21 = vmul.f32 %v1225_v46, %v500_v1 }
  0x7f   :  { %v516_v44 = vadd.f32 %v515_v26, %v513_v30  ;;  %v519_v22 = vsub.f32 %v517_v23, %v518_v31  ;;  %v522_v39 = vsub.f32 %v520_v20, %v521_v28  ;;  %v527_v40 = vmul.f32 %v1228_v47, %v503_v9 }
  0x80   :  { %v525_v6 = vadd.f32 %v524_v45, %v523_v38  ;;  %v529_v42 = vmul.f32 %v1225_v46, %v503_v9  ;;  %v530_v43 = vmul.f32 %v1228_v47, %v500_v1  ;;  %v532_v41 = vmul.f32 %v1225_v46, %v506_v3 }
  0x81   :  { %v528_v55 = vadd.f32 %v527_v40, %v526_v21  ;;  %v533_v57 = vmul.f32 %v1228_v47, %v509_v33  ;;  %v535_v24 = vmul.f32 %v1225_v46, %v509_v33  ;;  %v536_v59 = vmul.f32 %v1228_v47, %v506_v3 }
  0x82   :  { %v531_v62 = vsub.f32 %v529_v42, %v530_v43  ;;  %v541_v63 = vmul.f32 %v1233_v48, %v516_v44  ;;  %v545_v0 = vmul.f32 %v1233_v48, %v519_v22  ;;  %v548_v5 = vmul.f32 %v1236_v49, %v516_v44 }
  0x83   :  { %v534_v7 = vsub.f32 %v532_v41, %v533_v57  ;;  %v537_v16 = vadd.f32 %v536_v59, %v535_v24  ;;  %v543_v1 = vmul.f32 %v1236_v49, %v528_v55  ;;  %v549_v8 = vmul.f32 %v1233_v48, %v528_v55 }
  0x84   :  { %v546_v9 = vmul.f32 %v1236_v49, %v531_v62  ;;  %v551_v18 = vmul.f32 %v1236_v49, %v519_v22  ;;  %v552_v46 = vmul.f32 %v1233_v48, %v531_v62  ;;  %v554_v47 = vmul.f32 %v1233_v48, %v522_v39 }
  0x85   :  { %v544_v3 = vsub.f32 %v541_v63, %v543_v1  ;;  %v550_v25 = vadd.f32 %v549_v8, %v548_v5  ;;  %v555_v26 = vmul.f32 %v1236_v49, %v534_v7  ;;  %v557_v23 = vmul.f32 %v1233_v48, %v525_v6 }
  0x86   :  { %v547_v30 = vsub.f32 %v545_v0, %v546_v9  ;;  %v553_v31 = vadd.f32 %v552_v46, %v551_v18  ;;  %v558_v20 = vmul.f32 %v1236_v49, %v537_v16  ;;  %v560_v28 = vmul.f32 %v1236_v49, %v522_v39 }
  0x87   :  { %v556_v33 = vsub.f32 %v554_v47, %v555_v26  ;;  %v561_v38 = vmul.f32 %v1233_v48, %v534_v7  ;;  %v563_v45 = vmul.f32 %v1236_v49, %v525_v6  ;;  %v564_v21 = vmul.f32 %v1233_v48, %v537_v16 }
  0x88   :  { %v559_v44 = vsub.f32 %v557_v23, %v558_v20  ;;  %v569_v22 = vmul.f32 %v1239_v36, %v544_v3  ;;  %v571_v40 = vmul.f32 %v1242_v50, %v547_v30  ;;  %v573_v42 = vmul.f32 %v1239_v36, %v547_v30 }
  0x89   :  { %v562_v43 = vadd.f32 %v561_v38, %v560_v28  ;;  %v565_v41 = vadd.f32 %v564_v21, %v563_v45  ;;  %v574_v55 = vmul.f32 %v1242_v50, %v544_v3  ;;  %v576_v39 = vmul.f32 %v1239_v36, %v550_v25 }
  0x8a   :  { %v572_v57 = vadd.f32 %v571_v40, %v569_v22  ;;  %v577_v24 = vmul.f32 %v1242_v50, %v553_v31  ;;  %v579_v49 = vmul.f32 %v1239_v36, %v553_v31  ;;  %v580_v48 = vmul.f32 %v1242_v50, %v550_v25 }
  0x8b   :  { %v575_v6 = vsub.f32 %v573_v42, %v574_v55  ;;  %v582_v59 = vmul.f32 %v1239_v36, %v556_v33  ;;  %v583_v62 = vmul.f32 %v1242_v50, %v559_v44  ;;  %v585_v63 = vmul.f32 %v1239_v36, %v559_v44 }
  0x8c   :  { %v578_v0 = vsub.f32 %v576_v39, %v577_v24  ;;  %v581_v5 = vadd.f32 %v580_v48, %v579_v49  ;;  %v586_v7 = vmul.f32 %v1242_v50, %v556_v33  ;;  %v588_v16 = vmul.f32 %v1239_v36, %v562_v43 }
  0x8d   :  { %v584_v1 = vadd.f32 %v583_v62, %v582_v59  ;;  %v589_v8 = vmul.f32 %v1242_v50, %v565_v41  ;;  %v591_v9 = vmul.f32 %v1239_v36, %v565_v41  ;;  %v592_v18 = vmul.f32 %v1242_v50, %v562_v43 }
  0x8e   :  { %v587_v46 = vsub.f32 %v585_v63, %v586_v7  ;;  %v594_v47 = vmul.f32 %v572_v57, %v1293_v2  ;;  %v597_v3 = vmul.f32 %v575_v6, %v1293_v2  ;;  %v600_v25 = vmul.f32 %v572_v57, %v1295_v19 }
  0x8f   :  { %v590_v26 = vsub.f32 %v588_v16, %v589_v8  ;;  %v593_v23 = vadd.f32 %v592_v18, %v591_v9  ;;  %v603_v30 = vmul.f32 %v575_v6, %v1295_v19  ;;  %v606_v31 = vmul.f32 %v578_v0, %v1293_v2 }
  0x90   :  { %v607_v20 = vmul.f32 %v584_v1, %v1295_v19  ;;  %v609_v28 = vmul.f32 %v581_v5, %v1293_v2  ;;  %v610_v36 = vmul.f32 %v587_v46, %v1295_v19  ;;  %v612_v50 = vmul.f32 %v578_v0, %v1295_v19 }
  0x91   :  { %v595_v33 = vmul.f32 %v590_v26, %v1295_v19  ;;  %v598_v38 = vmul.f32 %v593_v23, %v1295_v19  ;;  %v601_v45 = vmul.f32 %v590_v26, %v1293_v2  ;;  %v604_v21 = vmul.f32 %v593_v23, %v1293_v2 }
  0x92   :  { %v608_v44 = vsub.f32 %v606_v31, %v607_v20  ;;  %v611_v22 = vsub.f32 %v609_v28, %v610_v36  ;;  %v613_v40 = vmul.f32 %v584_v1, %v1293_v2  ;;  %v615_v42 = vmul.f32 %v581_v5, %v1295_v19 }
  0x93   :  { %v596_v43 = vsub.f32 %v594_v47, %v595_v33  ;;  %v599_v41 = vsub.f32 %v597_v3, %v598_v38  ;;  %v602_v55 = vadd.f32 %v601_v45, %v600_v25  ;;  %v605_v39 = vadd.f32 %v604_v21, %v603_v30 }
  0x94   :  { %v614_v57 = vadd.f32 %v613_v40, %v612_v50  ;;  %v616_v24 = vmul.f32 %v587_v46, %v1293_v2  ;;  %v619_v49 = vmul.f32 %v608_v44, %v1334_v13  ;;  %v622_v48 = vmul.f32 %v611_v22, %v1334_v13 }
  0x95   :  { %v618_v6 = vmul.f32 %v596_v43, %v1332_v12  ;;  %v621_v59 = vmul.f32 %v599_v41, %v1332_v12  ;;  %v624_v62 = vmul.f32 %v596_v43, %v1334_v13  ;;  %v625_v63 = vmul.f32 %v608_v44, %v1332_v12 }
  0x96   :  { %v617_v19 = vadd.f32 %v616_v24, %v615_v42  ;;  %v627_v0 = vmul.f32 %v599_v41, %v1334_v13  ;;  %v628_v5 = vmul.f32 %v611_v22, %v1332_v12  ;;  %v630_v7 = vmul.f32 %v602_v55, %v1332_v12 }
  0x97   :  { %v620_v2 = vsub.f32 %v618_v6, %v619_v49  ;;  %v623_v16 = vsub.f32 %v621_v59, %v622_v48  ;;  %v626_v1 = vadd.f32 %v625_v63, %v624_v62  ;;  %v631_v8 = vmul.f32 %v614_v57, %v1334_v13 }
  0x98   :  { %v629_v9 = vadd.f32 %v628_v5, %v627_v0  ;;  %v633_v18 = vmul.f32 %v605_v39, %v1332_v12  ;;  %v634_v46 = vmul.f32 %v617_v19, %v1334_v13  ;;  %v636_v47 = vmul.f32 %v602_v55, %v1334_v13 }
  0x99   :  { %v632_v3 = vsub.f32 %v630_v7, %v631_v8  ;;  %v637_v25 = vmul.f32 %v614_v57, %v1332_v12  ;;  %v639_v26 = vmul.f32 %v605_v39, %v1334_v13  ;;  %v640_v23 = vmul.f32 %v617_v19, %v1332_v12 }
  0x9a   :  { %v635_v30 = vsub.f32 %v633_v18, %v634_v46  ;;  %v645_v31 = vmul.f32 %v1247_v53, %v620_v2  ;;  %v649_v20 = vmul.f32 %v1247_v53, %v623_v16  ;;  %v652_v28 = vmul.f32 %v1250_v56, %v620_v2 }
  0x9b   :  { %v638_v36 = vadd.f32 %v637_v25, %v636_v47  ;;  %v641_v50 = vadd.f32 %v640_v23, %v639_v26  ;;  %v655_v33 = vmul.f32 %v1250_v56, %v623_v16  ;;  %v658_v38 = vmul.f32 %v1247_v53, %v626_v1 }
  0x9c   :  { %v659_v45 = vmul.f32 %v1250_v56, %v632_v3  ;;  %v661_v21 = vmul.f32 %v1247_v53, %v629_v9  ;;  %v662_v13 = vmul.f32 %v1250_v56, %v635_v30  ;;  %v664_v12 = vmul.f32 %v1250_v56, %v626_v1 }
  0x9d   :  { %v647_v44 = vmul.f32 %v1250_v56, %v638_v36  ;;  %v650_v22 = vmul.f32 %v1250_v56, %v641_v50  ;;  %v653_v40 = vmul.f32 %v1247_v53, %v638_v36  ;;  %v656_v42 = vmul.f32 %v1247_v53, %v641_v50 }
  0x9e   :  { %v660_v43 = vsub.f32 %v658_v38, %v659_v45  ;;  %v663_v41 = vsub.f32 %v661_v21, %v662_v13  ;;  %v665_v55 = vmul.f32 %v1247_v53, %v632_v3  ;;  %v667_v39 = vmul.f32 %v1250_v56, %v629_v9 }
  0x9f   :  { %v648_v57 = vsub.f32 %v645_v31, %v647_v44  ;;  %v651_v24 = vsub.f32 %v649_v20, %v650_v22  ;;  %v654_v49 = vadd.f32 %v653_v40, %v652_v28  ;;  %v657_v48 = vadd.f32 %v656_v42, %v655_v33 }
  0xa0   :  { %v666_v6 = vadd.f32 %v665_v55, %v664_v12  ;;  %v668_v59 = vmul.f32 %v1247_v53, %v635_v30  ;;  %v686_v62 = vmul.f32 %v1255_v58, %v660_v43  ;;  %v687_v63 = vmul.f32 %v1260_v60, %v663_v41 }
  0xa1   :  { %v673_v19 = vmul.f32 %v1255_v58, %v648_v57  ;;  %v675_v0 = vmul.f32 %v1260_v60, %v651_v24  ;;  %v677_v5 = vmul.f32 %v1255_v58, %v651_v24  ;;  %v678_v7 = vmul.f32 %v1260_v60, %v648_v57 }
  0xa2   :  { %v669_v56 = vadd.f32 %v668_v59, %v667_v39  ;;  %v680_v2 = vmul.f32 %v1255_v58, %v654_v49  ;;  %v681_v16 = vmul.f32 %v1260_v60, %v657_v48  ;;  %v683_v1 = vmul.f32 %v1255_v58, %v657_v48 }
  0xa3   :  { %v676_v53 = vadd.f32 %v675_v0, %v673_v19  ;;  %v679_v8 = vsub.f32 %v677_v5, %v678_v7  ;;  %v684_v9 = vmul.f32 %v1260_v60, %v654_v49  ;;  %v688_v18 = vadd.f32 %v687_v63, %v686_v62 }
  0xa4   :  { %v682_v46 = vsub.f32 %v680_v2, %v681_v16  ;;  %v689_v47 = vmul.f32 %v1255_v58, %v663_v41  ;;  %v690_v3 = vmul.f32 %v1260_v60, %v660_v43  ;;  %v692_v25 = vmul.f32 %v1255_v58, %v666_v6 }
  0xa5   :  { %v685_v26 = vadd.f32 %v684_v9, %v683_v1  ;;  %v693_v23 = vmul.f32 %v1260_v60, %v669_v56  ;;  %v695_v30 = vmul.f32 %v1255_v58, %v669_v56  ;;  %v696_v31 = vmul.f32 %v1260_v60, %v666_v6 }
  0xa6   :  { %v691_v20 = vsub.f32 %v689_v47, %v690_v3  ;;  %v701_v28 = vmul.f32 %v1263_v61, %v676_v53  ;;  %v703_v36 = vmul.f32 %v1271_v10, %v688_v18  ;;  %v705_v50 = vmul.f32 %v1263_v61, %v679_v8 }
  0xa7   :  { %v694_v33 = vsub.f32 %v692_v25, %v693_v23  ;;  %v697_v38 = vadd.f32 %v696_v31, %v695_v30  ;;  %v708_v45 = vmul.f32 %v1271_v10, %v676_v53  ;;  %v709_v21 = vmul.f32 %v1263_v61, %v688_v18 }
  0xa8   :  { %v704_v13 = vsub.f32 %v701_v28, %v703_v36  ;;  %v706_v12 = vmul.f32 %v1271_v10, %v691_v20  ;;  %v711_v58 = vmul.f32 %v1271_v10, %v679_v8  ;;  %v712_v60 = vmul.f32 %v1263_v61, %v691_v20 }
  0xa9   :  { %v710_v44 = vadd.f32 %v709_v21, %v708_v45  ;;  %v714_v22 = vmul.f32 %v1263_v61, %v682_v46  ;;  %v715_v40 = vmul.f32 %v1271_v10, %v694_v33  ;;  %v717_v42 = vmul.f32 %v1263_v61, %v685_v26 }
  0xaa   :  { %v707_v43 = vsub.f32 %v705_v50, %v706_v12  ;;  %v713_v41 = vadd.f32 %v712_v60, %v711_v58  ;;  %v718_v55 = vmul.f32 %v1271_v10, %v697_v38  ;;  %v720_v39 = vmul.f32 %v1271_v10, %v682_v46 }
  0xab   :  { %v716_v57 = vsub.f32 %v714_v22, %v715_v40  ;;  %v721_v24 = vmul.f32 %v1263_v61, %v694_v33  ;;  %v723_v49 = vmul.f32 %v1271_v10, %v685_v26  ;;  %v724_v48 = vmul.f32 %v1263_v61, %v697_v38 }
  0xac   :  { %v719_v6 = vsub.f32 %v717_v42, %v718_v55  ;;  %v729_v59 = vmul.f32 %v1274_v11, %v704_v13  ;;  %v731_v62 = vmul.f32 %v1283_v14, %v707_v43  ;;  %v733_v63 = vmul.f32 %v1274_v11, %v707_v43 }
  0xad   :  { %v722_v19 = vadd.f32 %v721_v24, %v720_v39  ;;  %v725_v0 = vadd.f32 %v724_v48, %v723_v49  ;;  %v734_v5 = vmul.f32 %v1283_v14, %v704_v13  ;;  %v736_v7 = vmul.f32 %v1274_v11, %v710_v44 }
  0xae   :  { %v732_v56 = vadd.f32 %v731_v62, %v729_v59  ;;  %v737_v2 = vmul.f32 %v1283_v14, %v713_v41  ;;  %v739_v10 = vmul.f32 %v1274_v11, %v713_v41  ;;  %v740_v61 = vmul.f32 %v1283_v14, %v710_v44 }
  0xaf   :  { %v735_v16 = vsub.f32 %v733_v63, %v734_v5  ;;  %v742_v1 = vmul.f32 %v1274_v11, %v716_v57  ;;  %v743_v53 = vmul.f32 %v1283_v14, %v719_v6  ;;  %v745_v8 = vmul.f32 %v1274_v11, %v719_v6 }
  0xb0   :  { %v738_v9 = vsub.f32 %v736_v7, %v737_v2  ;;  %v741_v18 = vadd.f32 %v740_v61, %v739_v10  ;;  %v746_v46 = vmul.f32 %v1283_v14, %v716_v57  ;;  %v748_v47 = vmul.f32 %v1274_v11, %v722_v19 }
  0xb1   :  { %v744_v3 = vadd.f32 %v743_v53, %v742_v1  ;;  %v749_v25 = vmul.f32 %v1283_v14, %v725_v0  ;;  %v751_v26 = vmul.f32 %v1274_v11, %v725_v0  ;;  %v752_v23 = vmul.f32 %v1283_v14, %v722_v19 }
  0xb2   :  { %v747_v30 = vsub.f32 %v745_v8, %v746_v46  ;;  %v754_v31 = vmul.f32 %v732_v56, %v1324_v52  ;;  %v757_v20 = vmul.f32 %v735_v16, %v1324_v52  ;;  %v760_v28 = vmul.f32 %v732_v56, %v1326_v54 }
  0xb3   :  { %v750_v36 = vsub.f32 %v748_v47, %v749_v25  ;;  %v753_v50 = vadd.f32 %v752_v23, %v751_v26  ;;  %v763_v33 = vmul.f32 %v735_v16, %v1326_v54  ;;  %v766_v38 = vmul.f32 %v738_v9, %v1324_v52 }
  0xb4   :  { %v767_v45 = vmul.f32 %v744_v3, %v1326_v54  ;;  %v769_v21 = vmul.f32 %v741_v18, %v1324_v52  ;;  %v770_v11 = vmul.f32 %v747_v30, %v1326_v54  ;;  %v772_v14 = vmul.f32 %v738_v9, %v1326_v54 }
  0xb5   :  { %v755_v13 = vmul.f32 %v750_v36, %v1326_v54  ;;  %v758_v12 = vmul.f32 %v753_v50, %v1326_v54  ;;  %v761_v58 = vmul.f32 %v750_v36, %v1324_v52  ;;  %v764_v60 = vmul.f32 %v753_v50, %v1324_v52 }
  0xb6   :  { %v768_v44 = vsub.f32 %v766_v38, %v767_v45  ;;  %v771_v22 = vsub.f32 %v769_v21, %v770_v11  ;;  %v773_v40 = vmul.f32 %v744_v3, %v1324_v52  ;;  %v775_v42 = vmul.f32 %v741_v18, %v1326_v54 }
  0xb7   :  { %v756_v43 = vsub.f32 %v754_v31, %v755_v13  ;;  %v759_v41 = vsub.f32 %v757_v20, %v758_v12  ;;  %v762_v55 = vadd.f32 %v761_v58, %v760_v28  ;;  %v765_v39 = vadd.f32 %v764_v60, %v763_v33 }
  0xb8   :  { %v774_v57 = vadd.f32 %v773_v40, %v772_v14  ;;  %v776_v24 = vmul.f32 %v747_v30, %v1324_v52  ;;  %v779_v49 = vmul.f32 %v768_v44, %v1342_v32  ;;  %v782_v48 = vmul.f32 %v771_v22, %v1342_v32 }
  0xb9   :  { %v778_v6 = vmul.f32 %v756_v43, %v1340_v4  ;;  %v781_v59 = vmul.f32 %v759_v41, %v1340_v4  ;;  %v784_v62 = vmul.f32 %v756_v43, %v1342_v32  ;;  %v785_v63 = vmul.f32 %v768_v44, %v1340_v4 }
  0xba   :  { %v777_v54 = vadd.f32 %v776_v24, %v775_v42  ;;  %v787_v19 = vmul.f32 %v759_v41, %v1342_v32  ;;  %v788_v0 = vmul.f32 %v771_v22, %v1340_v4  ;;  %v790_v5 = vmul.f32 %v762_v55, %v1340_v4 }
  0xbb   :  { %v780_v52 = vsub.f32 %v778_v6, %v779_v49  ;;  %v783_v7 = vsub.f32 %v781_v59, %v782_v48  ;;  %v786_v56 = vadd.f32 %v785_v63, %v784_v62  ;;  %v791_v2 = vmul.f32 %v774_v57, %v1342_v32 }
  0xbc   :  { %v789_v10 = vadd.f32 %v788_v0, %v787_v19  ;;  %v793_v61 = vmul.f32 %v765_v39, %v1340_v4  ;;  %v794_v16 = vmul.f32 %v777_v54, %v1342_v32  ;;  %v796_v1 = vmul.f32 %v762_v55, %v1342_v32 }
  0xbd   :  { %v792_v53 = vsub.f32 %v790_v5, %v791_v2  ;;  %v797_v8 = vmul.f32 %v774_v57, %v1340_v4  ;;  %v799_v9 = vmul.f32 %v765_v39, %v1342_v32  ;;  %v800_v18 = vmul.f32 %v777_v54, %v1340_v4 }
  0xbe   :  { %v795_v46 = vsub.f32 %v793_v61, %v794_v16  ;;  %v805_v47 = vmul.f32 %v1286_v15, %v780_v52  ;;  %v809_v3 = vmul.f32 %v1286_v15, %v783_v7  ;;  %v812_v25 = vmul.f32 %v1289_v17, %v780_v52 }
  0xbf   :  { %v798_v26 = vadd.f32 %v797_v8, %v796_v1  ;;  %v801_v23 = vadd.f32 %v800_v18, %v799_v9  ;;  %v815_v30 = vmul.f32 %v1289_v17, %v783_v7  ;;  %v818_v31 = vmul.f32 %v1286_v15, %v786_v56 }
  0xc0   :  { %v819_v20 = vmul.f32 %v1289_v17, %v792_v53  ;;  %v821_v28 = vmul.f32 %v1286_v15, %v789_v10  ;;  %v822_v32 = vmul.f32 %v1289_v17, %v795_v46  ;;  %v824_v4 = vmul.f32 %v1289_v17, %v786_v56 }
  0xc1   :  { %v807_v36 = vmul.f32 %v1289_v17, %v798_v26  ;;  %v810_v50 = vmul.f32 %v1289_v17, %v801_v23  ;;  %v813_v33 = vmul.f32 %v1286_v15, %v798_v26  ;;  %v816_v38 = vmul.f32 %v1286_v15, %v801_v23 }
  0xc2   :  { %v820_v45 = vsub.f32 %v818_v31, %v819_v20  ;;  %v823_v21 = vsub.f32 %v821_v28, %v822_v32  ;;  %v825_v11 = vmul.f32 %v1286_v15, %v792_v53  ;;  %v827_v14 = vmul.f32 %v1289_v17, %v789_v10 }
  0xc3   :  { %v808_v13 = vsub.f32 %v805_v47, %v807_v36  ;;  %v811_v12 = vsub.f32 %v809_v3, %v810_v50  ;;  %v814_v58 = vadd.f32 %v813_v33, %v812_v25  ;;  %v817_v60 = vadd.f32 %v816_v38, %v815_v30 }
  0xc4   :  { %v826_v44 = vadd.f32 %v825_v11, %v824_v4  ;;  %v828_v22 = vmul.f32 %v1286_v15, %v795_v46  ;;  %v846_v40 = vmul.f32 %v1298_v27, %v820_v45  ;;  %v847_v42 = vmul.f32 %v1304_v29, %v823_v21 }
  0xc5   :  { %v833_v43 = vmul.f32 %v1298_v27, %v808_v13  ;;  %v835_v41 = vmul.f32 %v1304_v29, %v811_v12  ;;  %v837_v55 = vmul.f32 %v1298_v27, %v811_v12  ;;  %v838_v39 = vmul.f32 %v1304_v29, %v808_v13 }
  0xc6   :  { %v829_v17 = vadd.f32 %v828_v22, %v827_v14  ;;  %v840_v57 = vmul.f32 %v1298_v27, %v814_v58  ;;  %v841_v24 = vmul.f32 %v1304_v29, %v817_v60  ;;  %v843_v49 = vmul.f32 %v1298_v27, %v817_v60 }
  0xc7   :  { %v836_v15 = vadd.f32 %v835_v41, %v833_v43  ;;  %v839_v48 = vsub.f32 %v837_v55, %v838_v39  ;;  %v844_v6 = vmul.f32 %v1304_v29, %v814_v58  ;;  %v848_v59 = vadd.f32 %v847_v42, %v846_v40 }
  0xc8   :  { %v842_v62 = vsub.f32 %v840_v57, %v841_v24  ;;  %v849_v63 = vmul.f32 %v1298_v27, %v823_v21  ;;  %v850_v54 = vmul.f32 %v1304_v29, %v820_v45  ;;  %v852_v19 = vmul.f32 %v1298_v27, %v826_v44 }
  0xc9   :  { %v845_v0 = vadd.f32 %v844_v6, %v843_v49  ;;  %v853_v5 = vmul.f32 %v1304_v29, %v829_v17  ;;  %v855_v52 = vmul.f32 %v1298_v27, %v829_v17  ;;  %v856_v7 = vmul.f32 %v1304_v29, %v826_v44 }
  0xca   :  { %v851_v56 = vsub.f32 %v849_v63, %v850_v54  ;;  %v861_v2 = vmul.f32 %v1309_v34, %v836_v15  ;;  %v863_v10 = vmul.f32 %v1312_v35, %v848_v59  ;;  %v865_v61 = vmul.f32 %v1309_v34, %v839_v48 }
  0xcb   :  { %v854_v16 = vsub.f32 %v852_v19, %v853_v5  ;;  %v857_v1 = vadd.f32 %v856_v7, %v855_v52  ;;  %v868_v53 = vmul.f32 %v1312_v35, %v836_v15  ;;  %v869_v8 = vmul.f32 %v1309_v34, %v848_v59 }
  0xcc   :  { %v864_v9 = vsub.f32 %v861_v2, %v863_v10  ;;  %v866_v18 = vmul.f32 %v1312_v35, %v851_v56  ;;  %v871_v27 = vmul.f32 %v1312_v35, %v839_v48  ;;  %v872_v29 = vmul.f32 %v1309_v34, %v851_v56 }
  0xcd   :  { %v870_v46 = vadd.f32 %v869_v8, %v868_v53  ;;  %v874_v47 = vmul.f32 %v1309_v34, %v842_v62  ;;  %v875_v3 = vmul.f32 %v1312_v35, %v854_v16  ;;  %v877_v25 = vmul.f32 %v1309_v34, %v845_v0 }
  0xce   :  { %v867_v26 = vsub.f32 %v865_v61, %v866_v18  ;;  %v873_v23 = vadd.f32 %v872_v29, %v871_v27  ;;  %v878_v30 = vmul.f32 %v1312_v35, %v857_v1  ;;  %v880_v31 = vmul.f32 %v1312_v35, %v842_v62 }
  0xcf   :  { %v876_v20 = vsub.f32 %v874_v47, %v875_v3  ;;  %v881_v28 = vmul.f32 %v1309_v34, %v854_v16  ;;  %v883_v32 = vmul.f32 %v1312_v35, %v845_v0  ;;  %v884_v4 = vmul.f32 %v1309_v34, %v857_v1 }
  0xd0   :  { %v879_v36 = vsub.f32 %v877_v25, %v878_v30  ;;  %v889_v50 = vmul.f32 %v1315_v37, %v864_v9  ;;  %v891_v33 = vmul.f32 %v1322_v51, %v867_v26  ;;  %v893_v38 = vmul.f32 %v1315_v37, %v867_v26 }
  0xd1   :  { %v882_v45 = vadd.f32 %v881_v28, %v880_v31  ;;  %v885_v21 = vadd.f32 %v884_v4, %v883_v32  ;;  %v894_v11 = vmul.f32 %v1322_v51, %v864_v9  ;;  %v896_v14 = vmul.f32 %v1315_v37, %v870_v46 }
  0xd2   :  { %v892_v13 = vadd.f32 %v891_v33, %v889_v50  ;;  %v897_v12 = vmul.f32 %v1322_v51, %v873_v23  ;;  %v899_v35 = vmul.f32 %v1315_v37, %v873_v23  ;;  %v900_v34 = vmul.f32 %v1322_v51, %v870_v46 }
  0xd3   :  { %v895_v58 = vsub.f32 %v893_v38, %v894_v11  ;;  %v902_v60 = vmul.f32 %v1315_v37, %v876_v20  ;;  %v903_v44 = vmul.f32 %v1322_v51, %v879_v36  ;;  %v905_v22 = vmul.f32 %v1315_v37, %v879_v36 }
  0xd4   :  { %v898_v40 = vsub.f32 %v896_v14, %v897_v12  ;;  %v901_v42 = vadd.f32 %v900_v34, %v899_v35  ;;  %v906_v43 = vmul.f32 %v1322_v51, %v876_v20  ;;  %v908_v41 = vmul.f32 %v1315_v37, %v882_v45 }
  0xd5   :  { %v904_v55 = vadd.f32 %v903_v44, %v902_v60  ;;  %v909_v39 = vmul.f32 %v1322_v51, %v885_v21  ;;  %v911_v17 = vmul.f32 %v1315_v37, %v885_v21  ;;  %v912_v57 = vmul.f32 %v1322_v51, %v882_v45 }
  0xd6   :  { %v907_v24 = vsub.f32 %v905_v22, %v906_v43  ;;  %v914_v49 = vmul.f32 %v892_v13, %v892_v13  ;;  %v915_v15 = vmul.f32 %v895_v58, %v895_v58  ;;  %v920_v59 = vmul.f32 %v898_v40, %v898_v40 }
  0xd7   :  { %v910_v48 = vsub.f32 %v908_v41, %v909_v39  ;;  %v913_v6 = vadd.f32 %v912_v57, %v911_v17  ;;  %v921_v62 = vmul.f32 %v901_v42, %v901_v42  ;;  %v923_v63 = vmul.f32 %v904_v55, %v904_v55 }
  0xd8   :  { %v916_v54 = vadd.f32 %v915_v15, %v914_v49  ;;  %v924_v5 = vmul.f32 %v907_v24, %v907_v24 }
  0xd9   :  { %v917_v19 = vmul.f32 %v910_v48, %v910_v48  ;;  %v918_v0 = vmul.f32 %v913_v6, %v913_v6  ;;  %v922_v7 = vadd.f32 %v921_v62, %v920_v59 }
  0xda   :  { %v925_v56 = vadd.f32 %v924_v5, %v923_v63 }
  0xdb   :  { %v919_v52 = vadd.f32 %v918_v0, %v917_v19 }
  0xdd   :  { %v926_v2 = vadd.f32 %v919_v52, %v916_v54  ;;  %v930_v10 = vsub.f32 %v916_v54, %v919_v52 }
  0xdf   :  { %v927_v37 = vsub.f32 %v926_v2, %v922_v7  ;;  %v931_v51 = vadd.f32 %v930_v10, %v922_v7 }
  0xe1   :  { %v928_v61 = vsub.f32 %v927_v37, %v925_v56  ;;  %v932_v16 = vsub.f32 %v931_v51, %v925_v56 }
  0xe3   :  { %929 = vst [vmem:[#allocation5] sm:$0x1] %v928_v61  ;;  %934 = vst [vmem:[#allocation5 + $0x1] sm:$0x1] %v932_v16 }
  0xe4   :  { %1048 = shalt.err (!%p1045_p9)
}
  0xe5   :  { %s1070_s0 = smov 16   ;;  %s1071_s21 = smov 1  }
  0xe6   :  { %946 = dma.vmem_to_hbm [thread:$0]  %s941_s19, 32, %s1605_s3, [#allocation6], %s1070_s0, %s1070_s0, %s1071_s21  }
  0xe7   :  { %1059 = dma.done.wait [#allocation6], 32  }
  0xe8   :  { %1060 = vsyncadd [#allocation6], 4294967264 }
  0xe9   :  { %950 = vsyncpa [#allocation6], 1 }

</bundles_post_ra>
